<compile_context>
chip_gen: v7x
topology: tpu7x:2x2x1
jax: 0.10.0
libtpu: 0.0.40
codegen_flags: <defaults>
</compile_context>

<pallas_src>
import jax
import jax.numpy as jnp
from jax.experimental import pallas as pl
from jax.experimental.pallas import tpu as pltpu


_NEG_SLOPE = 0.01  # F.leaky_relu default


def _leaky_relu_f32(h):
    return jnp.where(h >= 0, h, jnp.float32(_NEG_SLOPE) * h)


# ---------------------------------------------------------------------------
# Kernel: x @ W1 + b1 -> lrelu -> @ W2 + b2 -> lrelu -> @ W3 + b3 -> lrelu
#         -> @ Whead + bhead   (Whead = [W4 || W5], BN folds already applied)
# ---------------------------------------------------------------------------
def dnn_kernel(
    x_ref,
    w1_ref, b1_ref,
    w2_ref, b2_ref,
    w3_ref, b3_ref,
    wh_ref, bh_ref,
    out_ref,
):
    # Layer 1 (BN1 folded into w1/b1)
    h = jnp.dot(x_ref[...], w1_ref[...], preferred_element_type=jnp.float32)
    h = _leaky_relu_f32(h + b1_ref[...]).astype(w2_ref.dtype)

    # Layer 2 (BN2 folded; dropout2 = identity in eval)
    h = jnp.dot(h, w2_ref[...], preferred_element_type=jnp.float32)
    h = _leaky_relu_f32(h + b2_ref[...]).astype(w3_ref.dtype)

    # Layer 3 (BN3 folded; dropout3 = identity)
    h = jnp.dot(h, w3_ref[...], preferred_element_type=jnp.float32)
    h = _leaky_relu_f32(h + b3_ref[...]).astype(wh_ref.dtype)

    # Fused heads dense4 || dense5 (BN4 folded; dropout4 = identity)
    out = jnp.dot(h, wh_ref[...], preferred_element_type=jnp.float32) + bh_ref[...]
    out_ref[...] = out.astype(out_ref.dtype)


# ---------------------------------------------------------------------------
# Parameter glue (pure JAX, runs once; not the hot path)
# ---------------------------------------------------------------------------
def _round_up(n, m):
    return (n + m - 1) // m * m


def _bn_fold(gamma, beta, mean, var, eps=1e-5):
    """BatchNorm1d eval mode -> per-feature (scale, shift)."""
    scale = gamma / jnp.sqrt(var + eps)
    shift = beta - mean * scale
    return scale.astype(jnp.float32), shift.astype(jnp.float32)


def _weight_norm_t(v, g):
    """nn.utils.weight_norm (dim=0): W[i,:] = g[i]*v[i,:]/||v[i,:]||.
    Returns the effective weight transposed to (in_dim, out_dim)."""
    norm = jnp.sqrt(jnp.sum(v * v, axis=1, keepdims=True))
    w = g[:, None] * v / norm           # (out, in)
    return w.T.astype(jnp.float32)      # (in, out)


def _fold_bn_into_linear(scale, shift, w, b):
    """(x*s + t) @ W + b  ==  x @ (s[:,None]*W) + (t@W + b)."""
    w_eff = scale[:, None] * w
    b_eff = shift @ w + b.astype(jnp.float32)
    return w_eff, b_eff


def _pad2(a, rows, cols):
    return jnp.pad(a, ((0, rows - a.shape[0]), (0, cols - a.shape[1])))


# ---------------------------------------------------------------------------
# Forward wrapper
# ---------------------------------------------------------------------------
def dnn_forward(x, params, *, batch_tile=128, compute_dtype=jnp.bfloat16):
    """Fused Dnn forward. x: (B, num_features) float32. Returns (y, y1)."""
    B, F = x.shape
    H = params["v1"].shape[0]
    T = params["v4"].shape[0]
    O2 = params["v5"].shape[0]

    # ---- fold BN -> linear, apply weight_norm, fuse heads ----
    s1, t1 = _bn_fold(params["bn1_g"], params["bn1_b"], params["bn1_m"], params["bn1_v"])
    s2, t2 = _bn_fold(params["bn2_g"], params["bn2_b"], params["bn2_m"], params["bn2_v"])
    s3, t3 = _bn_fold(params["bn3_g"], params["bn3_b"], params["bn3_m"], params["bn3_v"])
    s4, t4 = _bn_fold(params["bn4_g"], params["bn4_b"], params["bn4_m"], params["bn4_v"])

    w1 = _weight_norm_t(params["v1"], params["g1"])
    w2 = _weight_norm_t(params["v2"], params["g2"])
    w3 = _weight_norm_t(params["v3"], params["g3"])
    w4 = _weight_norm_t(params["v4"], params["g4"])
    w5 = _weight_norm_t(params["v5"], params["g5"])

    w1, b1 = _fold_bn_into_linear(s1, t1, w1, params["b1"])
    w2, b2 = _fold_bn_into_linear(s2, t2, w2, params["b2"])
    w3, b3 = _fold_bn_into_linear(s3, t3, w3, params["b3"])
    w4, b4 = _fold_bn_into_linear(s4, t4, w4, params["b4"])
    w5, b5 = _fold_bn_into_linear(s4, t4, w5, params["b5"])

    wh = jnp.concatenate([w4, w5], axis=1)     # (H, T + O2)
    bh = jnp.concatenate([b4, b5], axis=0)     # (T + O2,)

    # ---- pad every contraction / output dim to a multiple of 128 ----
    F_pad = _round_up(F, 128)
    H_pad = _round_up(H, 128)
    N = T + O2
    N_pad = _round_up(N, 128)

    w1p = _pad2(w1, F_pad, H_pad).astype(compute_dtype)
    w2p = _pad2(w2, H_pad, H_pad).astype(compute_dtype)
    w3p = _pad2(w3, H_pad, H_pad).astype(compute_dtype)
    whp = _pad2(wh, H_pad, N_pad).astype(compute_dtype)
    b1p = jnp.pad(b1, (0, H_pad - H))[None, :].astype(jnp.float32)
    b2p = jnp.pad(b2, (0, H_pad - H))[None, :].astype(jnp.float32)
    b3p = jnp.pad(b3, (0, H_pad - H))[None, :].astype(jnp.float32)
    bhp = jnp.pad(bh, (0, N_pad - N))[None, :].astype(jnp.float32)

    # ---- pad batch to a tile multiple (handles ragged B) ----
    B_pad = _round_up(B, batch_tile)
    xp = jnp.pad(x, ((0, B_pad - B), (0, F_pad - F))).astype(compute_dtype)

    # ---- pallas_call: tile batch only; weights/biases are grid-invariant ----
    batched = lambda shape: pl.BlockSpec(shape, lambda i: (i, 0))
    rep = lambda shape: pl.BlockSpec(shape, lambda i: (0, 0))
    # TODO(synk): for very large hidden_size on v7x (64 MiB VMEM), use
    # pipeline_mode=pl.Buffered(1) on the replicated weight specs or add a K/N
    # grid axis; unnecessary at these sizes.

    in_specs = [
        batched((batch_tile, F_pad)),                 # x
        rep((F_pad, H_pad)), rep((1, H_pad)),         # layer 1
        rep((H_pad, H_pad)), rep((1, H_pad)),         # layer 2
        rep((H_pad, H_pad)), rep((1, H_pad)),         # layer 3
        rep((H_pad, N_pad)), rep((1, N_pad)),         # fused heads
    ]
    out_specs = batched((batch_tile, N_pad))
    out_shape = jax.ShapeDtypeStruct((B_pad, N_pad), jnp.float32)

    fn = pl.pallas_call(
        dnn_kernel,
        grid=(B_pad // batch_tile,),
        in_specs=in_specs,
        out_specs=out_specs,
        out_shape=out_shape,
        compiler_params=pltpu.CompilerParams(
            dimension_semantics=("parallel",),
        ),
    )
    out = fn(xp, w1p, b1p, w2p, b2p, w3p, b3p, whp, bhp)

    y = out[:B, :T]
    y1 = out[:B, T:T + O2]
    return y, y1


# ---------------------------------------------------------------------------
# Deterministic synthetic parameters + pure-JAX reference
# ---------------------------------------------------------------------------
def make_params(key, num_features, num_targets, hidden_size):
    ks = jax.random.split(key, 32)
    k = iter(ks)

    def rnd(shape, scale=0.1):
        return (scale * jax.random.normal(next(k), shape)).astype(jnp.float32)

    p = {}
    for name, dim in (("bn1", num_features), ("bn2", hidden_size),
                      ("bn3", hidden_size), ("bn4", hidden_size)):
        p[f"{name}_g"] = 1.0 + rnd((dim,))
        p[f"{name}_b"] = rnd((dim,))
        p[f"{name}_m"] = rnd((dim,))
        p[f"{name}_v"] = 1.0 + jnp.abs(rnd((dim,)))
    dims = [
        ("1", hidden_size, num_features),
        ("2", hidden_size, hidden_size),
        ("3", hidden_size, hidden_size),
        ("4", num_targets, hidden_size),
        ("5", 402, hidden_size),
    ]
    for idx, out_d, in_d in dims:
        p[f"v{idx}"] = rnd((out_d, in_d), scale=0.2)
        p[f"g{idx}"] = 1.0 + rnd((out_d,))
        p[f"b{idx}"] = rnd((out_d,))
    return p


def reference_forward(x, params):
    """Pure-JAX eval-mode reference (explicit BN, unfused heads, f32)."""
    def bn(h, name):
        s, t = _bn_fold(params[f"{name}_g"], params[f"{name}_b"],
                        params[f"{name}_m"], params[f"{name}_v"])
        return h * s[None, :] + t[None, :]

    def dense(h, idx):
        w = _weight_norm_t(params[f"v{idx}"], params[f"g{idx}"])
        return h @ w + params[f"b{idx}"][None, :]

    lrelu = lambda h: jnp.where(h >= 0, h, 0.01 * h)
    h = bn(x, "bn1")
    h = lrelu(dense(h, "1"))
    h = bn(h, "bn2")
    h = lrelu(dense(h, "2"))
    h = bn(h, "bn3")
    h = lrelu(dense(h, "3"))
    h = bn(h, "bn4")
    return dense(h, "4"), dense(h, "5")


if __name__ == "__main__":
    num_features, num_targets, hidden_size = 32, 16, 32
    batch = 8

    key = jax.random.PRNGKey(0)
    kx, kp = jax.random.split(key)
    x = jax.random.normal(kx, (batch, num_features), dtype=jnp.float32)
    params = make_params(kp, num_features, num_targets, hidden_size)

    ry, ry1 = reference_forward(x, params)

    # fp32-operand path: tight check of fold/fusion/padding semantics.
    y32, y1_32 = dnn_forward(x, params, batch_tile=128, compute_dtype=jnp.float32)
    y32, y1_32 = jax.block_until_ready((y32, y1_32))
    assert y32.shape == (batch, num_targets) and y1_32.shape == (batch, 402)
    assert jnp.allclose(y32, ry, atol=1e-4, rtol=1e-4)
    assert jnp.allclose(y1_32, ry1, atol=1e-4, rtol=1e-4)

    # bf16-operand path (default / fast on v6e & v7x, f32 accumulation).
    y, y1 = dnn_forward(x, params, batch_tile=128, compute_dtype=jnp.bfloat16)
    y, y1 = jax.block_until_ready((y, y1))
    assert y.shape == (batch, num_targets) and y1.shape == (batch, 402)
    assert jnp.allclose(y, ry, atol=5e-2, rtol=5e-2)
    assert jnp.allclose(y1, ry1, atol=5e-2, rtol=5e-2)

    print("KERNEL_OK")
</pallas_src>

<mosaic_0001>
module attributes {stable_mosaic.version = 11 : i64} {
  func.func @dnn_kernel(%arg0: i32, %arg1: memref<128x128xf32, #tpu.memory_space<vmem>>, %arg2: memref<128x128xf32, #tpu.memory_space<vmem>>, %arg3: memref<1x128xf32, #tpu.memory_space<vmem>>, %arg4: memref<128x128xf32, #tpu.memory_space<vmem>>, %arg5: memref<1x128xf32, #tpu.memory_space<vmem>>, %arg6: memref<128x128xf32, #tpu.memory_space<vmem>>, %arg7: memref<1x128xf32, #tpu.memory_space<vmem>>, %arg8: memref<128x512xf32, #tpu.memory_space<vmem>>, %arg9: memref<1x512xf32, #tpu.memory_space<vmem>>, %arg10: memref<128x512xf32, #tpu.memory_space<vmem>>) attributes {dimension_semantics = [#tpu.dimension_semantics<parallel>], iteration_bounds = array<i64: 1>, scalar_prefetch = 0 : i64, scratch_operands = 0 : i64, tpu.core_type = #tpu.core_type<tc>, window_params = [{transform_indices = @transform_0, window_bounds = array<i64: 128, 128>}, {pipeline_mode = #tpu.pipeline_mode<synchronous>, transform_indices = @transform_1, window_bounds = array<i64: 128, 128>}, {pipeline_mode = #tpu.pipeline_mode<synchronous>, transform_indices = @transform_2, window_bounds = array<i64: 1, 128>}, {pipeline_mode = #tpu.pipeline_mode<synchronous>, transform_indices = @transform_3, window_bounds = array<i64: 128, 128>}, {pipeline_mode = #tpu.pipeline_mode<synchronous>, transform_indices = @transform_4, window_bounds = array<i64: 1, 128>}, {pipeline_mode = #tpu.pipeline_mode<synchronous>, transform_indices = @transform_5, window_bounds = array<i64: 128, 128>}, {pipeline_mode = #tpu.pipeline_mode<synchronous>, transform_indices = @transform_6, window_bounds = array<i64: 1, 128>}, {pipeline_mode = #tpu.pipeline_mode<synchronous>, transform_indices = @transform_7, window_bounds = array<i64: 128, 512>}, {pipeline_mode = #tpu.pipeline_mode<synchronous>, transform_indices = @transform_8, window_bounds = array<i64: 1, 512>}, {transform_indices = @transform_9, window_bounds = array<i64: 128, 512>}]} {
    %c0 = arith.constant 0 : index
    %c0_0 = arith.constant 0 : index
    %0 = vector.load %arg1[%c0, %c0_0] : memref<128x128xf32, #tpu.memory_space<vmem>>, vector<128x128xf32>
    %c0_1 = arith.constant 0 : index
    %c0_2 = arith.constant 0 : index
    %1 = vector.load %arg2[%c0_1, %c0_2] : memref<128x128xf32, #tpu.memory_space<vmem>>, vector<128x128xf32>
    %cst = arith.constant dense<0.000000e+00> : vector<128x128xf32>
    %2 = tpu.matmul %0, %1, %cst {dimension_numbers = #tpu.dot_dimension_numbers<[1], [0], [0], [1], [0, 0, 1, 1], [], []>} : vector<128x128xf32>, vector<128x128xf32>, vector<128x128xf32> -> vector<128x128xf32>
    %c0_3 = arith.constant 0 : index
    %c0_4 = arith.constant 0 : index
    %3 = vector.load %arg3[%c0_3, %c0_4] : memref<1x128xf32, #tpu.memory_space<vmem>>, vector<1x128xf32>
    %4 = vector.broadcast %3 : vector<1x128xf32> to vector<128x128xf32>
    %5 = arith.addf %2, %4 : vector<128x128xf32>
    %cst_5 = arith.constant 0.000000e+00 : f32
    %6 = vector.broadcast %cst_5 : f32 to vector<128x128xf32>
    %7 = arith.cmpf oge, %5, %6 : vector<128x128xf32>
    %cst_6 = arith.constant 0.00999999977 : f32
    %8 = vector.broadcast %cst_6 : f32 to vector<128x128xf32>
    %9 = arith.mulf %8, %5 : vector<128x128xf32>
    %10 = arith.select %7, %5, %9 : vector<128x128xi1>, vector<128x128xf32>
    %c0_7 = arith.constant 0 : index
    %c0_8 = arith.constant 0 : index
    %11 = vector.load %arg4[%c0_7, %c0_8] : memref<128x128xf32, #tpu.memory_space<vmem>>, vector<128x128xf32>
    %cst_9 = arith.constant dense<0.000000e+00> : vector<128x128xf32>
    %12 = tpu.matmul %10, %11, %cst_9 {dimension_numbers = #tpu.dot_dimension_numbers<[1], [0], [0], [1], [0, 0, 1, 1], [], []>} : vector<128x128xf32>, vector<128x128xf32>, vector<128x128xf32> -> vector<128x128xf32>
    %c0_10 = arith.constant 0 : index
    %c0_11 = arith.constant 0 : index
    %13 = vector.load %arg5[%c0_10, %c0_11] : memref<1x128xf32, #tpu.memory_space<vmem>>, vector<1x128xf32>
    %14 = vector.broadcast %13 : vector<1x128xf32> to vector<128x128xf32>
    %15 = arith.addf %12, %14 : vector<128x128xf32>
    %cst_12 = arith.constant 0.000000e+00 : f32
    %16 = vector.broadcast %cst_12 : f32 to vector<128x128xf32>
    %17 = arith.cmpf oge, %15, %16 : vector<128x128xf32>
    %cst_13 = arith.constant 0.00999999977 : f32
    %18 = vector.broadcast %cst_13 : f32 to vector<128x128xf32>
    %19 = arith.mulf %18, %15 : vector<128x128xf32>
    %20 = arith.select %17, %15, %19 : vector<128x128xi1>, vector<128x128xf32>
    %c0_14 = arith.constant 0 : index
    %c0_15 = arith.constant 0 : index
    %21 = vector.load %arg6[%c0_14, %c0_15] : memref<128x128xf32, #tpu.memory_space<vmem>>, vector<128x128xf32>
    %cst_16 = arith.constant dense<0.000000e+00> : vector<128x128xf32>
    %22 = tpu.matmul %20, %21, %cst_16 {dimension_numbers = #tpu.dot_dimension_numbers<[1], [0], [0], [1], [0, 0, 1, 1], [], []>} : vector<128x128xf32>, vector<128x128xf32>, vector<128x128xf32> -> vector<128x128xf32>
    %c0_17 = arith.constant 0 : index
    %c0_18 = arith.constant 0 : index
    %23 = vector.load %arg7[%c0_17, %c0_18] : memref<1x128xf32, #tpu.memory_space<vmem>>, vector<1x128xf32>
    %24 = vector.broadcast %23 : vector<1x128xf32> to vector<128x128xf32>
    %25 = arith.addf %22, %24 : vector<128x128xf32>
    %cst_19 = arith.constant 0.000000e+00 : f32
    %26 = vector.broadcast %cst_19 : f32 to vector<128x128xf32>
    %27 = arith.cmpf oge, %25, %26 : vector<128x128xf32>
    %cst_20 = arith.constant 0.00999999977 : f32
    %28 = vector.broadcast %cst_20 : f32 to vector<128x128xf32>
    %29 = arith.mulf %28, %25 : vector<128x128xf32>
    %30 = arith.select %27, %25, %29 : vector<128x128xi1>, vector<128x128xf32>
    %c0_21 = arith.constant 0 : index
    %c0_22 = arith.constant 0 : index
    %31 = vector.load %arg8[%c0_21, %c0_22] : memref<128x512xf32, #tpu.memory_space<vmem>>, vector<128x512xf32>
    %cst_23 = arith.constant dense<0.000000e+00> : vector<128x512xf32>
    %32 = tpu.matmul %30, %31, %cst_23 {dimension_numbers = #tpu.dot_dimension_numbers<[1], [0], [0], [1], [0, 0, 1, 1], [], []>} : vector<128x128xf32>, vector<128x512xf32>, vector<128x512xf32> -> vector<128x512xf32>
    %c0_24 = arith.constant 0 : index
    %c0_25 = arith.constant 0 : index
    %33 = vector.load %arg9[%c0_24, %c0_25] : memref<1x512xf32, #tpu.memory_space<vmem>>, vector<1x512xf32>
    %34 = vector.broadcast %33 : vector<1x512xf32> to vector<128x512xf32>
    %35 = arith.addf %32, %34 : vector<128x512xf32>
    %c0_26 = arith.constant 0 : index
    %c0_27 = arith.constant 0 : index
    %36 = vector.load %arg10[%c0_26, %c0_27] : memref<128x512xf32, #tpu.memory_space<vmem>>, vector<128x512xf32>
    tpu.vector_store %arg10[%c0_26, %c0_27], %35 {strides = array<i32>} : memref<128x512xf32, #tpu.memory_space<vmem>>, vector<128x512xf32>,
    return
  }
  func.func @transform_0(%arg0: i32) -> (i32, i32) {
    %c0_i32 = arith.constant 0 : i32
    %c0_i32_0 = arith.constant 0 : i32
    return %arg0, %c0_i32 : i32, i32
  }
  func.func @transform_1(%arg0: i32) -> (i32, i32) {
    %c0_i32 = arith.constant 0 : i32
    %c0_i32_0 = arith.constant 0 : i32
    %c0_i32_1 = arith.constant 0 : i32
    return %c0_i32, %c0_i32_0 : i32, i32
  }
  func.func @transform_2(%arg0: i32) -> (i32, i32) {
    %c0_i32 = arith.constant 0 : i32
    %c0_i32_0 = arith.constant 0 : i32
    %c0_i32_1 = arith.constant 0 : i32
    return %c0_i32, %c0_i32_0 : i32, i32
  }
  func.func @transform_3(%arg0: i32) -> (i32, i32) {
    %c0_i32 = arith.constant 0 : i32
    %c0_i32_0 = arith.constant 0 : i32
    %c0_i32_1 = arith.constant 0 : i32
    return %c0_i32, %c0_i32_0 : i32, i32
  }
  func.func @transform_4(%arg0: i32) -> (i32, i32) {
    %c0_i32 = arith.constant 0 : i32
    %c0_i32_0 = arith.constant 0 : i32
    %c0_i32_1 = arith.constant 0 : i32
    return %c0_i32, %c0_i32_0 : i32, i32
  }
  func.func @transform_5(%arg0: i32) -> (i32, i32) {
    %c0_i32 = arith.constant 0 : i32
    %c0_i32_0 = arith.constant 0 : i32
    %c0_i32_1 = arith.constant 0 : i32
    return %c0_i32, %c0_i32_0 : i32, i32
  }
  func.func @transform_6(%arg0: i32) -> (i32, i32) {
    %c0_i32 = arith.constant 0 : i32
    %c0_i32_0 = arith.constant 0 : i32
    %c0_i32_1 = arith.constant 0 : i32
    return %c0_i32, %c0_i32_0 : i32, i32
  }
  func.func @transform_7(%arg0: i32) -> (i32, i32) {
    %c0_i32 = arith.constant 0 : i32
    %c0_i32_0 = arith.constant 0 : i32
    %c0_i32_1 = arith.constant 0 : i32
    return %c0_i32, %c0_i32_0 : i32, i32
  }
  func.func @transform_8(%arg0: i32) -> (i32, i32) {
    %c0_i32 = arith.constant 0 : i32
    %c0_i32_0 = arith.constant 0 : i32
    %c0_i32_1 = arith.constant 0 : i32
    return %c0_i32, %c0_i32_0 : i32, i32
  }
  func.func @transform_9(%arg0: i32) -> (i32, i32) {
    %c0_i32 = arith.constant 0 : i32
    %c0_i32_0 = arith.constant 0 : i32
    return %arg0, %c0_i32 : i32, i32
  }
}

</mosaic_0001>

<bundles_post_ra>
// kernel: tpu_custom_call.1
= control target key start
LH: loop header
LB: loop body
LE: loop exit
PB: predicated region body
PF: predicated region fallthrough
CT: control target
= control target key end

     0   :  { %14 = vsyncpa [#allocation3], 0  ;;  %s2249_s0 = inlined_call_operand.hbm [shape: f32[128,128], index: 0, kind: input, shape index: {}]   ;;  %s2250_s1 = inlined_call_operand.hbm [shape: f32[128,128], index: 1, kind: input, shape index: {}]   ;;  %s2251_s2 = inlined_call_operand.vmem [shape: f32[1,128], index: 2, kind: input, shape index: {}]   ;;  %s2252_s3 = inlined_call_operand.hbm [shape: f32[128,128], index: 3, kind: input, shape index: {}]   ;;  %s2253_s4 = inlined_call_operand.vmem [shape: f32[1,128], index: 4, kind: input, shape index: {}]   ;;  %s2254_s5 = inlined_call_operand.hbm [shape: f32[128,128], index: 5, kind: input, shape index: {}]   ;;  %s2255_s6 = inlined_call_operand.vmem [shape: f32[1,128], index: 6, kind: input, shape index: {}]   ;;  %s2256_s7 = inlined_call_operand.hbm [shape: f32[128,512], index: 7, kind: input, shape index: {}]   ;;  %s2257_s8 = inlined_call_operand.vmem [shape: f32[1,512], index: 8, kind: input, shape index: {}]   ;;  %s2258_s9 = inlined_call_operand.hbm [shape: f32[128,512], index: 9, kind: output, shape index: {}]  }
   0x1   :  { %15 = vsyncpa [#allocation6], 0 }
   0x2   :  { %16 = vsyncpa [#allocation9], 0 }
   0x3   :  { %17 = vsyncpa [#allocation4], 0  ;;  %s1850_s30 = smov [#allocation5]   ;;  %s1851_s11 = smov [#allocation8]  }
   0x4   :  { %s35_s10 = sshll.u32 %s1850_s30, 4  ;;  %s63_s12 = sshll.u32 %s1851_s11, 4  ;;  %s36_s10 = int_to_ptr.vmem [resolvable:$true] %s35_s10  ;;  %s1911_s12 = int_to_ptr.vmem [resolvable:$true] %s63_s12 }
   0x5   :  { %s1710_s15 = scalar_lea.hbm %s2250_s1, 2048 }
   0x6   :  { %p1711_p0 = scmp.ne.s32.totalorder %s2250_s1, %s1710_s15  ;;  %p1714_p1 = scmp.lt.u32.totalorder %s1710_s15, %s2250_s1 }
   0x8   :  { %p1716_p2 = pnand %p1714_p1, %p1711_p0 }
   0xa   :  { %1719 = shalt.err (!%p1716_p2)
}
   0xb   :  { %s1720_s20 = scalar_lea.vmem %s36_s10, 2048  ;;  %p1725_p4 = scmp.lt.s32.totalorder %s36_s10, %s36_s10 }
   0xc   :  { %p1721_p3 = scmp.ne.s32.totalorder %s36_s10, %s1720_s20  ;;  %p1726_p5 = scmp.lt.s32.totalorder %s1720_s20, %s1720_s20 }
   0xe   :  { %p1727_p6 = por %p1726_p5, %p1725_p4 }
  0x10   :  { %p1728_p7 = pnand %p1727_p6, %p1721_p3 }
  0x12   :  { %1731 = shalt.err (!%p1728_p7)
}
  0x13   :  { %s1852_s21 = smov 128   ;;  %s1853_s22 = smov 8  }
  0x14   :  { %41 = dma.hbm_to_vmem [thread:$0]  %s2250_s1, 2048, %s36_s10, [#allocation6], %s1852_s21, %s1852_s21, %s1853_s22  }
  0x15   :  { %s1732_s27 = scalar_lea.hbm %s2254_s5, 2048 }
  0x16   :  { %p1733_p8 = scmp.ne.s32.totalorder %s2254_s5, %s1732_s27  ;;  %p1736_p9 = scmp.lt.u32.totalorder %s1732_s27, %s2254_s5 }
  0x18   :  { %p1738_p10 = pnand %p1736_p9, %p1733_p8 }
  0x1a   :  { %1741 = shalt.err (!%p1738_p10)
}
  0x1b   :  { %s1742_s13 = scalar_lea.vmem %s1911_s12, 2048  ;;  %p1747_p12 = scmp.lt.s32.totalorder %s1911_s12, %s1911_s12 }
  0x1c   :  { %p1743_p11 = scmp.ne.s32.totalorder %s1911_s12, %s1742_s13  ;;  %p1748_p13 = scmp.lt.s32.totalorder %s1742_s13, %s1742_s13 }
  0x1e   :  { %p1749_p0 = por %p1748_p13, %p1747_p12 }
  0x20   :  { %p1750_p1 = pnand %p1749_p0, %p1743_p11 }
  0x22   :  { %1753 = shalt.err (!%p1750_p1)
}
  0x23   :  { %69 = dma.hbm_to_vmem [thread:$0]  %s2254_s5, 2048, %s1911_s12, [#allocation9], %s1852_s21, %s1852_s21, %s1853_s22  }
  0x24   :  { %s1854_s14 = smov [#allocation2]   ;;  %s1855_s16 = smov [#allocation7]  }
  0x25   :  { %s23_s15 = sshll.u32 %s1854_s14, 4  ;;  %s49_s17 = sshll.u32 %s1855_s16, 4  ;;  %s24_s15 = int_to_ptr.vmem [resolvable:$true] %s23_s15  ;;  %s1948_s17 = int_to_ptr.vmem [resolvable:$true] %s49_s17 }
  0x26   :  { %s1754_s20 = scalar_lea.hbm %s2249_s0, 2048 }
  0x27   :  { %p1755_p2 = scmp.ne.s32.totalorder %s2249_s0, %s1754_s20  ;;  %p1758_p3 = scmp.lt.u32.totalorder %s1754_s20, %s2249_s0 }
  0x29   :  { %p1760_p4 = pnand %p1758_p3, %p1755_p2 }
  0x2b   :  { %1763 = shalt.err (!%p1760_p4)
}
  0x2c   :  { %s1764_s5 = scalar_lea.vmem %s24_s15, 2048  ;;  %p1769_p6 = scmp.lt.s32.totalorder %s24_s15, %s24_s15 }
  0x2d   :  { %p1765_p5 = scmp.ne.s32.totalorder %s24_s15, %s1764_s5  ;;  %p1770_p7 = scmp.lt.s32.totalorder %s1764_s5, %s1764_s5 }
  0x2f   :  { %p1771_p8 = por %p1770_p7, %p1769_p6 }
  0x31   :  { %p1772_p9 = pnand %p1771_p8, %p1765_p5 }
  0x33   :  { %1775 = shalt.err (!%p1772_p9)
}
  0x34   :  { %29 = dma.hbm_to_vmem [thread:$0]  %s2249_s0, 2048, %s24_s15, [#allocation3], %s1852_s21, %s1852_s21, %s1853_s22  }
  0x35   :  { %s1776_s30 = scalar_lea.hbm %s2252_s3, 2048 }
  0x36   :  { %p1777_p10 = scmp.ne.s32.totalorder %s2252_s3, %s1776_s30  ;;  %p1780_p11 = scmp.lt.u32.totalorder %s1776_s30, %s2252_s3 }
  0x38   :  { %p1782_p12 = pnand %p1780_p11, %p1777_p10 }
  0x3a   :  { %1785 = shalt.err (!%p1782_p12)
}
  0x3b   :  { %s1786_s14 = scalar_lea.vmem %s1948_s17, 2048  ;;  %p1791_p0 = scmp.lt.s32.totalorder %s1948_s17, %s1948_s17 }
  0x3c   :  { %p1787_p13 = scmp.ne.s32.totalorder %s1948_s17, %s1786_s14  ;;  %p1792_p1 = scmp.lt.s32.totalorder %s1786_s14, %s1786_s14 }
  0x3e   :  { %p1793_p2 = por %p1792_p1, %p1791_p0 }
  0x40   :  { %p1794_p3 = pnand %p1793_p2, %p1787_p13 }
  0x42   :  { %1797 = shalt.err (!%p1794_p3)
}
  0x43   :  { %55 = dma.hbm_to_vmem [thread:$0]  %s2252_s3, 2048, %s1948_s17, [#allocation6], %s1852_s21, %s1852_s21, %s1853_s22  }
  0x44   :  { %s1856_s16 = smov [#allocation10]   ;;  %s1798_s23 = scalar_lea.hbm %s2256_s7, 8192 }
  0x45   :  { %s77_s18 = sshll.u32 %s1856_s16, 4  ;;  %p1799_p4 = scmp.ne.s32.totalorder %s2256_s7, %s1798_s23  ;;  %s78_s18 = int_to_ptr.vmem [resolvable:$true] %s77_s18 }
  0x46   :  { %p1802_p5 = scmp.lt.u32.totalorder %s1798_s23, %s2256_s7 }
  0x48   :  { %p1804_p6 = pnand %p1802_p5, %p1799_p4 }
  0x4a   :  { %1807 = shalt.err (!%p1804_p6)
}
  0x4b   :  { %s1808_s12 = scalar_lea.vmem %s78_s18, 8192  ;;  %p1813_p8 = scmp.lt.s32.totalorder %s78_s18, %s78_s18 }
  0x4c   :  { %p1809_p7 = scmp.ne.s32.totalorder %s78_s18, %s1808_s12  ;;  %p1814_p9 = scmp.lt.s32.totalorder %s1808_s12, %s1808_s12 }
  0x4e   :  { %p1815_p10 = por %p1814_p9, %p1813_p8 }
  0x50   :  { %p1816_p11 = pnand %p1815_p10, %p1809_p7 }
  0x52   :  { %1819 = shalt.err (!%p1816_p11)
}
  0x53   :  { %s1857_s3 = smov 512   ;;  %s1858_s21 = smov 32  }
  0x54   :  { %83 = dma.hbm_to_vmem [thread:$0]  %s2256_s7, 8192, %s78_s18, [#allocation9], %s1857_s3, %s1857_s3, %s1858_s21  }
  0x55   :  { %1842 = dma.done.wait [#allocation3], 2048  }
  0x56   :  { %1843 = vsyncadd [#allocation3], 4294965248 }
  0x57   :  { %1844 = dma.done.wait [#allocation6], 4096  }
  0x58   :  { %1845 = vsyncadd [#allocation6], 4294963200 }
  0x59   :  { %1846 = dma.done.wait [#allocation9], 10240  }
  0x5a   :  { %1847 = vsyncadd [#allocation9], 4294957056  ;;  %v117_v0 = vld [vmem:[#allocation5] sm:$0xff]  ;;  %v118_v1 = vld [vmem:[#allocation5 + $0x8] sm:$0xff] }
  0x5b   :  { %v119_v2 = vld [vmem:[#allocation5 + $0x10] sm:$0xff]  ;;  %v1523_v3 = vpack.c.bf16 %v118_v1, %v117_v0  ;;  %v120_v4 = vld [vmem:[#allocation5 + $0x18] sm:$0xff]  ;;  %v121_v6 = vld [vmem:[#allocation5 + $0x20] sm:$0xff] }
  0x5c   :  { %v1527_v5 = vpack.c.bf16 %v120_v4, %v119_v2  ;;  %v122_v7 = vld [vmem:[#allocation5 + $0x28] sm:$0xff]  ;;  %v101_v9 = vld [vmem:[#allocation2] sm:$0xff]  ;;  %v123_v10 = vld [vmem:[#allocation5 + $0x30] sm:$0xff] }
  0x5d   :  { %1524 = vmatprep.subr.bf16.mxu0 %v1523_v3  ;;  %v1531_v8 = vpack.c.bf16 %v122_v7, %v121_v6  ;;  %v124_v11 = vld [vmem:[#allocation5 + $0x38] sm:$0xff]  ;;  %1387 = vmatprep.mubr.f32.mxu0 %v101_v9  ;;  %v125_v13 = vld [vmem:[#allocation5 + $0x40] sm:$0xff]  ;;  %v126_v14 = vld [vmem:[#allocation5 + $0x48] sm:$0xff] }
  0x5e   :  { %1526 = vmatpush3.bf16.msra.mxu0 %v1523_v3  ;;  %v1535_v12 = vpack.c.bf16 %v124_v11, %v123_v10  ;;  %v333_v15 = vld [vmem:[#allocation7] sm:$0xff]  ;;  %v334_v16 = vld [vmem:[#allocation7 + $0x8] sm:$0xff]  ;;  %v335_v17 = vld [vmem:[#allocation7 + $0x10] sm:$0xff]  ;;  %v1539_v21 = vpack.c.bf16 %v126_v14, %v125_v13 }
  0x5f   :  { %1528 = vmatprep.subr.bf16.mxu0 %v1527_v5  ;;  %v336_v18 = vld [vmem:[#allocation7 + $0x18] sm:$0xff]  ;;  %v1555_v19 = vpack.c.bf16 %v334_v16, %v333_v15  ;;  %v337_v22 = vld [vmem:[#allocation7 + $0x20] sm:$0xff]  ;;  %v338_v23 = vld [vmem:[#allocation7 + $0x28] sm:$0xff] }
  0x60   :  { %v1559_v20 = vpack.c.bf16 %v336_v18, %v335_v17  ;;  %v127_v24 = vld [vmem:[#allocation5 + $0x50] sm:$0xff]  ;;  %v128_v25 = vld [vmem:[#allocation5 + $0x58] sm:$0xff]  ;;  %v1563_v26 = vpack.c.bf16 %v338_v23, %v337_v22  ;;  %v129_v30 = vld [vmem:[#allocation5 + $0x60] sm:$0xff] }
  0x61   :  { %1556 = vmatprep.subr.bf16.mxu1 %v1555_v19  ;;  %v1543_v27 = vpack.c.bf16 %v128_v25, %v127_v24  ;;  %v339_v28 = vld [vmem:[#allocation7 + $0x30] sm:$0xff]  ;;  %v340_v29 = vld [vmem:[#allocation7 + $0x38] sm:$0xff]  ;;  %v130_v31 = vld [vmem:[#allocation5 + $0x68] sm:$0xff] }
  0x62   :  { %1530 = vmatpush3.bf16.msra.mxu0 %v1527_v5  ;;  %1558 = vmatpush3.bf16.msra.mxu1 %v1555_v19  ;;  %v1567_v32 = vpack.c.bf16 %v340_v29, %v339_v28  ;;  %v1547_v33 = vpack.c.bf16 %v130_v31, %v129_v30  ;;  %v341_v34 = vld [vmem:[#allocation7 + $0x40] sm:$0xff]  ;;  %v342_v35 = vld [vmem:[#allocation7 + $0x48] sm:$0xff]  ;;  %v131_v36 = vld [vmem:[#allocation5 + $0x70] sm:$0xff] }
  0x63   :  { %1532 = vmatprep.subr.bf16.mxu0 %v1531_v8  ;;  %1560 = vmatprep.subr.bf16.mxu1 %v1559_v20  ;;  %v132_v37 = vld [vmem:[#allocation5 + $0x78] sm:$0xff]  ;;  %v1571_v38 = vpack.c.bf16 %v342_v35, %v341_v34  ;;  %v343_v40 = vld [vmem:[#allocation7 + $0x50] sm:$0xff]  ;;  %v102_v43 = vld [vmem:[#allocation2 + $0x8] sm:$0xff] }
  0x64   :  { %v1551_v39 = vpack.c.bf16 %v132_v37, %v131_v36  ;;  %v344_v41 = vld [vmem:[#allocation7 + $0x58] sm:$0xff]  ;;  %v103_v44 = vld [vmem:[#allocation2 + $0x10] sm:$0xff]  ;;  %v105_v46 = vld [vmem:[#allocation2 + $0x20] sm:$0xff] }
  0x65   :  { %v1575_v42 = vpack.c.bf16 %v344_v41, %v343_v40  ;;  %v104_v45 = vld [vmem:[#allocation2 + $0x18] sm:$0xff]  ;;  %v106_v47 = vld [vmem:[#allocation2 + $0x28] sm:$0xff]  ;;  %v107_v48 = vld [vmem:[#allocation2 + $0x30] sm:$0xff] }
  0x66   :  { %1534 = vmatpush3.bf16.msra.mxu0 %v1531_v8  ;;  %1562 = vmatpush3.bf16.msra.mxu1 %v1559_v20  ;;  %v108_v49 = vld [vmem:[#allocation2 + $0x38] sm:$0xff]  ;;  %v109_v50 = vld [vmem:[#allocation2 + $0x40] sm:$0xff]  ;;  %v110_v51 = vld [vmem:[#allocation2 + $0x48] sm:$0xff] }
  0x67   :  { %1536 = vmatprep.subr.bf16.mxu0 %v1535_v12  ;;  %1564 = vmatprep.subr.bf16.mxu1 %v1563_v26  ;;  %v111_v52 = vld [vmem:[#allocation2 + $0x50] sm:$0xff]  ;;  %v112_v53 = vld [vmem:[#allocation2 + $0x58] sm:$0xff]  ;;  %v113_v54 = vld [vmem:[#allocation2 + $0x60] sm:$0xff] }
  0x68   :  { %v114_v55 = vld [vmem:[#allocation2 + $0x68] sm:$0xff]  ;;  %v115_v56 = vld [vmem:[#allocation2 + $0x70] sm:$0xff]  ;;  %v116_v57 = vld [vmem:[#allocation2 + $0x78] sm:$0xff] }
  0x69   :  { %v345_v58 = vld [vmem:[#allocation7 + $0x60] sm:$0xff]  ;;  %v346_v59 = vld [vmem:[#allocation7 + $0x68] sm:$0xff]  ;;  %v347_v61 = vld [vmem:[#allocation7 + $0x70] sm:$0xff] }
  0x6a   :  { %1538 = vmatpush3.bf16.msra.mxu0 %v1535_v12  ;;  %1566 = vmatpush3.bf16.msra.mxu1 %v1563_v26  ;;  %v1579_v60 = vpack.c.bf16 %v346_v59, %v345_v58  ;;  %v348_v62 = vld [vmem:[#allocation7 + $0x78] sm:$0xff]  ;;  %v549_v0 = vld [vmem:[#allocation8] sm:$0xff]  ;;  %v550_v1 = vld [vmem:[#allocation8 + $0x8] sm:$0xff] }
  0x6b   :  { %1540 = vmatprep.subr.bf16.mxu0 %v1539_v21  ;;  %1568 = vmatprep.subr.bf16.mxu1 %v1567_v32  ;;  %v1583_v63 = vpack.c.bf16 %v348_v62, %v347_v61  ;;  %v551_v2 = vld [vmem:[#allocation8 + $0x10] sm:$0xff]  ;;  %v1587_v3 = vpack.c.bf16 %v550_v1, %v549_v0  ;;  %v552_v4 = vld [vmem:[#allocation8 + $0x18] sm:$0xff]  ;;  %v553_v6 = vld [vmem:[#allocation8 + $0x20] sm:$0xff] }
  0x6c   :  { %v1591_v5 = vpack.c.bf16 %v552_v4, %v551_v2  ;;  %v554_v7 = vld [vmem:[#allocation8 + $0x28] sm:$0xff]  ;;  %v555_v9 = vld [vmem:[#allocation8 + $0x30] sm:$0xff]  ;;  %v556_v10 = vld [vmem:[#allocation8 + $0x38] sm:$0xff] }
  0x6d   :  { %v1595_v8 = vpack.c.bf16 %v554_v7, %v553_v6  ;;  %v1599_v11 = vpack.c.bf16 %v556_v10, %v555_v9  ;;  %v557_v12 = vld [vmem:[#allocation8 + $0x40] sm:$0xff]  ;;  %v558_v13 = vld [vmem:[#allocation8 + $0x48] sm:$0xff]  ;;  %v559_v15 = vld [vmem:[#allocation8 + $0x50] sm:$0xff] }
  0x6e   :  { %1542 = vmatpush3.bf16.msra.mxu0 %v1539_v21  ;;  %1570 = vmatpush3.bf16.msra.mxu1 %v1567_v32  ;;  %v1603_v14 = vpack.c.bf16 %v558_v13, %v557_v12  ;;  %v560_v16 = vld [vmem:[#allocation8 + $0x58] sm:$0xff]  ;;  %v561_v18 = vld [vmem:[#allocation8 + $0x60] sm:$0xff]  ;;  %v562_v19 = vld [vmem:[#allocation8 + $0x68] sm:$0xff] }
  0x6f   :  { %1544 = vmatprep.subr.bf16.mxu0 %v1543_v27  ;;  %1572 = vmatprep.subr.bf16.mxu1 %v1571_v38  ;;  %v1607_v17 = vpack.c.bf16 %v560_v16, %v559_v15  ;;  %v1611_v20 = vpack.c.bf16 %v562_v19, %v561_v18  ;;  %v2003_v21 = vld [vmem:[%s2251_s2] ss:$0 sm:$0xff] }
  0x72   :  { %1546 = vmatpush3.bf16.msra.mxu0 %v1543_v27  ;;  %1574 = vmatpush3.bf16.msra.mxu1 %v1571_v38 }
  0x73   :  { %1548 = vmatprep.subr.bf16.mxu0 %v1547_v33  ;;  %1576 = vmatprep.subr.bf16.mxu1 %v1575_v42 }
  0x76   :  { %1550 = vmatpush3.bf16.msra.mxu0 %v1547_v33  ;;  %1578 = vmatpush3.bf16.msra.mxu1 %v1575_v42 }
  0x77   :  { %1552 = vmatprep.subr.bf16.mxu0 %v1551_v39  ;;  %1580 = vmatprep.subr.bf16.mxu1 %v1579_v60 }
  0x7a   :  { %1554 = vmatpush3.bf16.msra.mxu0 %v1551_v39  ;;  %1582 = vmatpush3.bf16.msra.mxu1 %v1579_v60 }
  0x7b   :  { %1584 = vmatprep.subr.bf16.mxu1 %v1583_v63  ;;  %1588 = vmatprep.subr.bf16.mxu0 %v1587_v3 }
  0x7d   :  { %1388 = vmatmul.mubr.f32.vlgmr.msra.gmra.mrb[0].mxu0 %v102_v43 }
  0x7e   :  { %1390 = vmatprep.mubr.f32.mxu0 %v103_v44  ;;  %1586 = vmatpush3.bf16.msra.mxu1 %v1583_v63 }
  0x7f   :  { %1590 = vmatpush3.bf16.msra.mxu0 %v1587_v3 }
  0x80   :  { %1592 = vmatprep.subr.bf16.mxu0 %v1591_v5 }
  0x81   :  { %1391 = vmatmul.mubr.f32.gmra.mrb[2].mxu0 %v104_v45 }
  0x82   :  { %1393 = vmatprep.mubr.f32.mxu0 %v105_v46 }
  0x83   :  { %1594 = vmatpush3.bf16.msra.mxu0 %v1591_v5 }
  0x84   :  { %1596 = vmatprep.subr.bf16.mxu0 %v1595_v8 }
  0x85   :  { %1394 = vmatmul.mubr.f32.gmra.mrb[4].mxu0 %v106_v47 }
  0x86   :  { %1396 = vmatprep.mubr.f32.mxu0 %v107_v48 }
  0x87   :  { %1598 = vmatpush3.bf16.msra.mxu0 %v1595_v8 }
  0x88   :  { %1600 = vmatprep.subr.bf16.mxu0 %v1599_v11 }
  0x89   :  { %1397 = vmatmul.mubr.f32.gmra.mrb[6].mxu0 %v108_v49 }
  0x8a   :  { %1399 = vmatprep.mubr.f32.mxu0 %v109_v50 }
  0x8b   :  { %1602 = vmatpush3.bf16.msra.mxu0 %v1599_v11 }
  0x8c   :  { %1604 = vmatprep.subr.bf16.mxu0 %v1603_v14 }
  0x8d   :  { %1400 = vmatmul.mubr.f32.gmra.mrb[8].mxu0 %v110_v51 }
  0x8e   :  { %1402 = vmatprep.mubr.f32.mxu0 %v111_v52 }
  0x8f   :  { %1606 = vmatpush3.bf16.msra.mxu0 %v1603_v14 }
  0x90   :  { %1608 = vmatprep.subr.bf16.mxu0 %v1607_v17 }
  0x91   :  { %1403 = vmatmul.mubr.f32.gmra.mrb[10].mxu0 %v112_v53 }
  0x92   :  { %1405 = vmatprep.mubr.f32.mxu0 %v113_v54 }
  0x93   :  { %1610 = vmatpush3.bf16.msra.mxu0 %v1607_v17 }
  0x94   :  { %1612 = vmatprep.subr.bf16.mxu0 %v1611_v20 }
  0x95   :  { %1406 = vmatmul.mubr.f32.gmra.mrb[12].mxu0 %v114_v55 }
  0x96   :  { %1408 = vmatprep.mubr.f32.mxu0 %v115_v56 }
  0x97   :  { %1614 = vmatpush3.bf16.msra.mxu0 %v1611_v20 }
  0x99   :  { %1409 = vmatmul.mubr.f32.gmra.mrb[14].mxu0 %v116_v57 }
 0x150   :  { %v1389_v22 = vpop.f32.mrb[0].mxu0 }
 0x151   :  { %v212_v23 = vadd.f32 %v1389_v22, %v2003_v21  ;;  %v206_v24 = vpop.f32.mrb[1].mxu0 }
 0x152   :  { %v207_v25 = vadd.f32 %v2003_v21, %v206_v24  ;;  %v564_v24 = vld [vmem:[#allocation8 + $0x78] sm:$0xff] }
 0x153   :  { %v302_v26 = vmul.f32 0.01, %v212_v23  ;;  %vm286_vm1 = vcmp.ge.f32.partialorder %v212_v23, 0.0 }
 0x154   :  { %v1392_v27 = vpop.f32.mrb[2].mxu0  ;;  %vm285_vm0 = vcmp.ge.f32.partialorder %v207_v25, 0.0  ;;  %v301_v28 = vmul.f32 0.01, %v207_v25 }
 0x155   :  { %v222_v29 = vadd.f32 %v1392_v27, %v2003_v21  ;;  %v216_v30 = vpop.f32.mrb[3].mxu0  ;;  %v318_v34 = vsel %vm286_vm1, %v212_v23, %v302_v26  ;;  %v563_v23 = vld [vmem:[#allocation8 + $0x70] sm:$0xff]  ;;  %v766_v26 = vld [vmem:[#allocation10 + $0x8] sm:$0xff] }
 0x156   :  { %v217_v31 = vadd.f32 %v2003_v21, %v216_v30  ;;  %v317_v32 = vsel %vm285_vm0, %v207_v25, %v301_v28  ;;  %v1615_v25 = vpack.c.bf16 %v564_v24, %v563_v23  ;;  %v770_v27 = vld [vmem:[#allocation10 + $0x28] sm:$0xff]  ;;  %v765_v28 = vld [vmem:[#allocation10] sm:$0xff]  ;;  %v768_v30 = vld [vmem:[#allocation10 + $0x18] sm:$0xff] }
 0x157   :  { %v304_v33 = vmul.f32 0.01, %v222_v29  ;;  %1443 = vmatprep.mubr.f32.mxu1 %v317_v32  ;;  %vm288_vm2 = vcmp.ge.f32.partialorder %v222_v29, 0.0 }
 0x158   :  { %v303_v35 = vmul.f32 0.01, %v217_v31  ;;  %v1395_v36 = vpop.f32.mrb[4].mxu0  ;;  %1444 = vmatmul.mubr.f32.vlgmr.msra.gmra.mrb[0].mxu1 %v318_v34  ;;  %vm287_vm3 = vcmp.ge.f32.partialorder %v217_v31, 0.0  ;;  %1616 = vmatprep.subr.bf16.mxu0 %v1615_v25  ;;  %v774_v34 = vld [vmem:[#allocation10 + $0x48] sm:$0xff] }
 0x159   :  { %v232_v37 = vadd.f32 %v1395_v36, %v2003_v21  ;;  %v226_v38 = vpop.f32.mrb[5].mxu0  ;;  %v320_v39 = vsel %vm288_vm2, %v222_v29, %v304_v33  ;;  %1618 = vmatpush3.bf16.msra.mxu0 %v1615_v25  ;;  %v1619_v29 = vpack.c.bf16 %v770_v27, %v766_v26  ;;  %v773_v36 = vld [vmem:[#allocation10 + $0x40] sm:$0xff]  ;;  %v775_v25 = vld [vmem:[#allocation10 + $0x50] sm:$0xff] }
 0x15a   :  { %v227_v40 = vadd.f32 %v2003_v21, %v226_v38  ;;  %v319_v41 = vsel %vm287_vm3, %v217_v31, %v303_v35  ;;  %v772_v31 = vld [vmem:[#allocation10 + $0x38] sm:$0xff]  ;;  %v778_v35 = vld [vmem:[#allocation10 + $0x68] sm:$0xff]  ;;  %v779_v26 = vld [vmem:[#allocation10 + $0x70] sm:$0xff] }
 0x15b   :  { %v306_v42 = vmul.f32 0.01, %v232_v37  ;;  %1446 = vmatprep.mubr.f32.mxu1 %v319_v41  ;;  %vm290_vm4 = vcmp.ge.f32.partialorder %v232_v37, 0.0  ;;  %v2021_v33 = vpack.c.bf16 %v772_v31, %v768_v30  ;;  %1620 = vmatprep.subr.bf16.mxu1 %v1619_v29  ;;  %v1623_v38 = vpack.c.bf16 %v778_v35, %v774_v34  ;;  %v786_v41 = vld [vmem:[#allocation10 + $0xa8] sm:$0xff]  ;;  %v784_v29 = vld [vmem:[#allocation10 + $0x98] sm:$0xff] }
 0x15c   :  { %v305_v43 = vmul.f32 0.01, %v227_v40  ;;  %1447 = vmatmul.mubr.f32.gmra.mrb[2].mxu1 %v320_v39  ;;  %v1398_v44 = vpop.f32.mrb[6].mxu0  ;;  %vm289_vm5 = vcmp.ge.f32.partialorder %v227_v40, 0.0  ;;  %v2039_v35 = vpack.c.bf16 %v779_v26, %v775_v25  ;;  %v816_v25 = vld [vmem:[#allocation10 + $0x198] sm:$0xff] }
 0x15d   :  { %v242_v45 = vadd.f32 %v1398_v44, %v2003_v21  ;;  %v236_v46 = vpop.f32.mrb[7].mxu0  ;;  %v322_v47 = vsel %vm290_vm4, %v232_v37, %v306_v42  ;;  %v777_v37 = vld [vmem:[#allocation10 + $0x60] sm:$0xff]  ;;  %1652 = vmatprep.subr.bf16.mxu0 %v2021_v33  ;;  %v820_v26 = vld [vmem:[#allocation10 + $0x1b8] sm:$0xff] }
 0x15e   :  { %v237_v48 = vadd.f32 %v2003_v21, %v236_v46  ;;  %v321_v49 = vsel %vm289_vm5, %v227_v40, %v305_v43  ;;  %v1625_v39 = vpack.c.bf16 %v777_v37, %v773_v36  ;;  %v782_v40 = vld [vmem:[#allocation10 + $0x88] sm:$0xff]  ;;  %v781_v43 = vld [vmem:[#allocation10 + $0x80] sm:$0xff] }
 0x15f   :  { %v308_v50 = vmul.f32 0.01, %v242_v45  ;;  %1449 = vmatprep.mubr.f32.mxu1 %v321_v49  ;;  %vm292_vm6 = vcmp.ge.f32.partialorder %v242_v45, 0.0  ;;  %v1627_v42 = vpack.c.bf16 %v786_v41, %v782_v40  ;;  %v785_v44 = vld [vmem:[#allocation10 + $0xa0] sm:$0xff]  ;;  %v790_v46 = vld [vmem:[#allocation10 + $0xc8] sm:$0xff]  ;;  %v787_v40 = vld [vmem:[#allocation10 + $0xb0] sm:$0xff] }
 0x160   :  { %v307_v51 = vmul.f32 0.01, %v237_v48  ;;  %1450 = vmatmul.mubr.f32.gmra.mrb[4].mxu1 %v322_v47  ;;  %vm291_vm7 = vcmp.ge.f32.partialorder %v237_v48, 0.0  ;;  %v1401_v52 = vpop.f32.mrb[8].mxu0  ;;  %v794_v47 = vld [vmem:[#allocation10 + $0xe8] sm:$0xff]  ;;  %v789_v49 = vld [vmem:[#allocation10 + $0xc0] sm:$0xff] }
 0x161   :  { %v252_v53 = vadd.f32 %v1401_v52, %v2003_v21  ;;  %v324_v54 = vsel %vm292_vm6, %v242_v45, %v308_v50  ;;  %v246_v55 = vpop.f32.mrb[9].mxu0  ;;  %v1629_v45 = vpack.c.bf16 %v785_v44, %v781_v43  ;;  %v793_v50 = vld [vmem:[#allocation10 + $0xe0] sm:$0xff]  ;;  %v802_v52 = vld [vmem:[#allocation10 + $0x128] sm:$0xff]  ;;  %v792_v43 = vld [vmem:[#allocation10 + $0xd8] sm:$0xff] }
 0x162   :  { %v323_v56 = vsel %vm291_vm7, %v237_v48, %v307_v51  ;;  %v247_v57 = vadd.f32 %v2003_v21, %v246_v55  ;;  %v1631_v48 = vpack.c.bf16 %v794_v47, %v790_v46  ;;  %v798_v51 = vld [vmem:[#allocation10 + $0x108] sm:$0xff]  ;;  %v797_v55 = vld [vmem:[#allocation10 + $0x100] sm:$0xff]  ;;  %v796_v44 = vld [vmem:[#allocation10 + $0xf8] sm:$0xff] }
 0x163   :  { %1452 = vmatprep.mubr.f32.mxu1 %v323_v56  ;;  %v310_v58 = vmul.f32 0.01, %v252_v53  ;;  %vm294_vm8 = vcmp.ge.f32.partialorder %v252_v53, 0.0  ;;  %v801_v56 = vld [vmem:[#allocation10 + $0x120] sm:$0xff] }
 0x164   :  { %1453 = vmatmul.mubr.f32.gmra.mrb[6].mxu1 %v324_v54  ;;  %v309_v59 = vmul.f32 0.01, %v247_v57  ;;  %vm293_vm9 = vcmp.ge.f32.partialorder %v247_v57, 0.0  ;;  %v1404_v60 = vpop.f32.mrb[10].mxu0  ;;  %v1635_v54 = vpack.c.bf16 %v802_v52, %v798_v51 }
 0x165   :  { %v262_v61 = vadd.f32 %v1404_v60, %v2003_v21  ;;  %v326_v62 = vsel %vm294_vm8, %v252_v53, %v310_v58  ;;  %v256_v63 = vpop.f32.mrb[11].mxu0  ;;  %v1633_v53 = vpack.c.bf16 %v793_v50, %v789_v49  ;;  %v810_v58 = vld [vmem:[#allocation10 + $0x168] sm:$0xff] }
 0x166   :  { %v325_v0 = vsel %vm293_vm9, %v247_v57, %v309_v59  ;;  %v257_v1 = vadd.f32 %v2003_v21, %v256_v63  ;;  %v806_v57 = vld [vmem:[#allocation10 + $0x148] sm:$0xff]  ;;  %v1637_v59 = vpack.c.bf16 %v801_v56, %v797_v55  ;;  %v795_v55 = vld [vmem:[#allocation10 + $0xf0] sm:$0xff] }
 0x167   :  { %1455 = vmatprep.mubr.f32.mxu1 %v325_v0  ;;  %v312_v2 = vmul.f32 0.01, %v262_v61  ;;  %vm296_vm10 = vcmp.ge.f32.partialorder %v262_v61, 0.0  ;;  %v1639_v60 = vpack.c.bf16 %v810_v58, %v806_v57  ;;  %v814_v63 = vld [vmem:[#allocation10 + $0x188] sm:$0xff]  ;;  %v800_v57 = vld [vmem:[#allocation10 + $0x118] sm:$0xff] }
 0x168   :  { %1456 = vmatmul.mubr.f32.gmra.mrb[8].mxu1 %v326_v62  ;;  %v311_v3 = vmul.f32 0.01, %v257_v1  ;;  %vm295_vm11 = vcmp.ge.f32.partialorder %v257_v1, 0.0  ;;  %v1407_v4 = vpop.f32.mrb[12].mxu0  ;;  %v809_v62 = vld [vmem:[#allocation10 + $0x160] sm:$0xff]  ;;  %v818_v0 = vld [vmem:[#allocation10 + $0x1a8] sm:$0xff] }
 0x169   :  { %v272_v5 = vadd.f32 %v1407_v4, %v2003_v21  ;;  %v328_v6 = vsel %vm296_vm10, %v262_v61, %v312_v2  ;;  %v266_v7 = vpop.f32.mrb[13].mxu0  ;;  %v805_v61 = vld [vmem:[#allocation10 + $0x140] sm:$0xff]  ;;  %v1643_v2 = vpack.c.bf16 %v818_v0, %v814_v63  ;;  %v804_v58 = vld [vmem:[#allocation10 + $0x138] sm:$0xff] }
 0x16a   :  { %v327_v8 = vsel %vm295_vm11, %v257_v1, %v311_v3  ;;  %v267_v9 = vadd.f32 %v2003_v21, %v266_v7  ;;  %v1641_v1 = vpack.c.bf16 %v809_v62, %v805_v61  ;;  %v813_v3 = vld [vmem:[#allocation10 + $0x180] sm:$0xff] }
 0x16b   :  { %1458 = vmatprep.mubr.f32.mxu1 %v327_v8  ;;  %v314_v10 = vmul.f32 0.01, %v272_v5  ;;  %vm298_vm12 = vcmp.ge.f32.partialorder %v272_v5, 0.0  ;;  %v817_v4 = vld [vmem:[#allocation10 + $0x1a0] sm:$0xff] }
 0x16c   :  { %1459 = vmatmul.mubr.f32.gmra.mrb[10].mxu1 %v328_v6  ;;  %v313_v11 = vmul.f32 0.01, %v267_v9  ;;  %vm297_vm13 = vcmp.ge.f32.partialorder %v267_v9, 0.0  ;;  %v1410_v12 = vpop.f32.mrb[14].mxu0  ;;  %v2027_v6 = vld [vmem:[%s2253_s4] ss:$0 sm:$0xff] }
 0x16d   :  { %v282_v13 = vadd.f32 %v1410_v12, %v2003_v21  ;;  %v330_v14 = vsel %vm298_vm12, %v272_v5, %v314_v10  ;;  %v276_v15 = vpop.f32.mrb[15].mxu0  ;;  %v1645_v5 = vpack.c.bf16 %v817_v4, %v813_v3  ;;  %v771_v12 = vld [vmem:[#allocation10 + $0x30] sm:$0xff]  ;;  %v2059_v3 = vpack.c.bf16 %v804_v58, %v800_v57  ;;  %v821_v57 = vld [vmem:[#allocation10 + $0x1c0] sm:$0xff] }
 0x16e   :  { %v329_v16 = vsel %vm297_vm13, %v267_v9, %v313_v11  ;;  %v277_v17 = vadd.f32 %v2003_v21, %v276_v15  ;;  %v769_v21 = vld [vmem:[#allocation10 + $0x20] sm:$0xff]  ;;  %v767_v11 = vld [vmem:[#allocation10 + $0x10] sm:$0xff]  ;;  %v780_v15 = vld [vmem:[#allocation10 + $0x78] sm:$0xff] }
 0x16f   :  { %1461 = vmatprep.mubr.f32.mxu1 %v329_v16  ;;  %v316_v18 = vmul.f32 0.01, %v282_v13  ;;  %vm300_vm14 = vcmp.ge.f32.partialorder %v282_v13, 0.0  ;;  %v1621_v32 = vpack.c.bf16 %v769_v21, %v765_v28  ;;  %v788_v21 = vld [vmem:[#allocation10 + $0xb8] sm:$0xff]  ;;  %v799_v4 = vld [vmem:[#allocation10 + $0x110] sm:$0xff]  ;;  %v825_v58 = vld [vmem:[#allocation10 + $0x1e0] sm:$0xff] }
 0x170   :  { %1462 = vmatmul.mubr.f32.gmra.mrb[12].mxu1 %v330_v14  ;;  %v315_v19 = vmul.f32 0.01, %v277_v17  ;;  %vm299_vm15 = vcmp.ge.f32.partialorder %v277_v17, 0.0  ;;  %v776_v14 = vld [vmem:[#allocation10 + $0x58] sm:$0xff] }
 0x171   :  { %v332_v20 = vsel %vm300_vm14, %v282_v13, %v316_v18  ;;  %1622 = vmatpush1.bf16.msra.mxu1 %v1621_v32  ;;  %v2035_v24 = vpack.c.bf16 %v780_v15, %v776_v14 }
 0x172   :  { %v331_v22 = vsel %vm299_vm15, %v277_v17, %v315_v19  ;;  %1624 = vmatprep.subr.bf16.mxu1 %v1623_v38  ;;  %v2043_v38 = vpack.c.bf16 %v788_v21, %v784_v29 }
 0x173   :  { %1464 = vmatprep.mubr.f32.mxu1 %v331_v22 }
 0x174   :  { %1465 = vmatmul.mubr.f32.gmra.mrb[14].mxu1 %v332_v20  ;;  %v2032_v20 = vpack.c.bf16 %v771_v12, %v767_v11 }
 0x175   :  { %1626 = vmatpush1.bf16.msra.mxu1 %v1625_v39  ;;  %v783_v39 = vld [vmem:[#allocation10 + $0x90] sm:$0xff] }
 0x176   :  { %1628 = vmatprep.subr.bf16.mxu1 %v1627_v42  ;;  %v2047_v50 = vpack.c.bf16 %v787_v40, %v783_v39 }
 0x179   :  { %1630 = vmatpush1.bf16.msra.mxu1 %v1629_v45 }
 0x17a   :  { %1632 = vmatprep.subr.bf16.mxu1 %v1631_v48 }
 0x17d   :  { %1634 = vmatpush1.bf16.msra.mxu1 %v1633_v53  ;;  %v2051_v53 = vpack.c.bf16 %v796_v44, %v792_v43 }
 0x17e   :  { %1636 = vmatprep.subr.bf16.mxu1 %v1635_v54  ;;  %v791_v54 = vld [vmem:[#allocation10 + $0xd0] sm:$0xff] }
 0x17f   :  { %v2055_v0 = vpack.c.bf16 %v795_v55, %v791_v54  ;;  %v822_v55 = vld [vmem:[#allocation10 + $0x1c8] sm:$0xff] }
 0x181   :  { %1638 = vmatpush1.bf16.msra.mxu1 %v1637_v59 }
 0x182   :  { %1640 = vmatprep.subr.bf16.mxu1 %v1639_v60 }
 0x185   :  { %1642 = vmatpush1.bf16.msra.mxu1 %v1641_v1 }
 0x186   :  { %1644 = vmatprep.subr.bf16.mxu1 %v1643_v2 }
 0x189   :  { %1646 = vmatpush1.bf16.msra.mxu1 %v1645_v5  ;;  %v803_v5 = vld [vmem:[#allocation10 + $0x130] sm:$0xff] }
 0x18a   :  { %v2063_v15 = vpack.c.bf16 %v803_v5, %v799_v4  ;;  %v1859_v4 = vmov 0.0   ;;  %v2096_v5 = vld [vmem:[%s2255_s6] ss:$0 sm:$0xff] }
 0x18b   :  { %915 = vmatprep.mubr.f32.mxu1 %v1859_v4 }
 0x22b   :  { %v1445_v7 = vpop.f32.mrb[0].mxu1 }
 0x22c   :  { %v428_v8 = vadd.f32 %v1445_v7, %v2027_v6  ;;  %v422_v9 = vpop.f32.mrb[1].mxu1 }
 0x22d   :  { %v423_v10 = vadd.f32 %v2027_v6, %v422_v9  ;;  %v812_v9 = vld [vmem:[#allocation10 + $0x178] sm:$0xff] }
 0x22e   :  { %v518_v13 = vmul.f32 0.01, %v428_v8  ;;  %vm502_vm0 = vcmp.ge.f32.partialorder %v428_v8, 0.0 }
 0x22f   :  { %v517_v16 = vmul.f32 0.01, %v423_v10  ;;  %v1448_v17 = vpop.f32.mrb[2].mxu1  ;;  %vm501_vm1 = vcmp.ge.f32.partialorder %v423_v10, 0.0 }
 0x230   :  { %v438_v18 = vadd.f32 %v1448_v17, %v2027_v6  ;;  %v432_v19 = vpop.f32.mrb[3].mxu1  ;;  %v534_v27 = vsel %vm502_vm0, %v428_v8, %v518_v13  ;;  %v808_v8 = vld [vmem:[#allocation10 + $0x158] sm:$0xff] }
 0x231   :  { %v433_v22 = vadd.f32 %v2027_v6, %v432_v19  ;;  %v533_v23 = vsel %vm501_vm1, %v423_v10, %v517_v16  ;;  %v807_v19 = vld [vmem:[#allocation10 + $0x150] sm:$0xff] }
 0x232   :  { %v520_v28 = vmul.f32 0.01, %v438_v18  ;;  %1499 = vmatprep.mubr.f32.mxu0 %v533_v23  ;;  %vm504_vm3 = vcmp.ge.f32.partialorder %v438_v18, 0.0 }
 0x233   :  { %v519_v30 = vmul.f32 0.01, %v433_v22  ;;  %v1451_v31 = vpop.f32.mrb[4].mxu1  ;;  %1500 = vmatmul.mubr.f32.vlgmr.msra.gmra.mrb[16].mxu0 %v534_v27  ;;  %vm503_vm2 = vcmp.ge.f32.partialorder %v433_v22, 0.0 }
 0x234   :  { %v448_v32 = vadd.f32 %v1451_v31, %v2027_v6  ;;  %v442_v34 = vpop.f32.mrb[5].mxu1  ;;  %1654 = vmatpush1.bf16.msra.mxu0 %v2032_v20  ;;  %v536_v42 = vsel %vm504_vm3, %v438_v18, %v520_v28  ;;  %v2067_v18 = vpack.c.bf16 %v812_v9, %v808_v8 }
 0x235   :  { %v443_v36 = vadd.f32 %v2027_v6, %v442_v34  ;;  %v535_v37 = vsel %vm503_vm2, %v433_v22, %v519_v30  ;;  %1656 = vmatprep.subr.bf16.mxu0 %v2035_v24  ;;  %v811_v22 = vld [vmem:[#allocation10 + $0x170] sm:$0xff] }
 0x236   :  { %v522_v41 = vmul.f32 0.01, %v448_v32  ;;  %1502 = vmatprep.mubr.f32.mxu0 %v535_v37  ;;  %vm506_vm4 = vcmp.ge.f32.partialorder %v448_v32, 0.0  ;;  %v2071_v31 = vpack.c.bf16 %v811_v22, %v807_v19 }
 0x237   :  { %v521_v45 = vmul.f32 0.01, %v443_v36  ;;  %1503 = vmatmul.mubr.f32.gmra.mrb[18].mxu0 %v536_v42  ;;  %v1454_v46 = vpop.f32.mrb[6].mxu1  ;;  %vm505_vm5 = vcmp.ge.f32.partialorder %v443_v36, 0.0 }
 0x238   :  { %v458_v47 = vadd.f32 %v1454_v46, %v2027_v6  ;;  %v452_v48 = vpop.f32.mrb[7].mxu1  ;;  %v538_v49 = vsel %vm506_vm4, %v448_v32, %v522_v41  ;;  %1658 = vmatpush1.bf16.msra.mxu0 %v2039_v35 }
 0x239   :  { %v453_v51 = vadd.f32 %v2027_v6, %v452_v48  ;;  %v537_v52 = vsel %vm505_vm5, %v443_v36, %v521_v45  ;;  %1660 = vmatprep.subr.bf16.mxu0 %v2043_v38  ;;  %v2075_v36 = vpack.c.bf16 %v820_v26, %v816_v25 }
 0x23a   :  { %v524_v56 = vmul.f32 0.01, %v458_v47  ;;  %1505 = vmatprep.mubr.f32.mxu0 %v537_v52  ;;  %vm508_vm6 = vcmp.ge.f32.partialorder %v458_v47, 0.0  ;;  %v819_v52 = vld [vmem:[#allocation10 + $0x1b0] sm:$0xff] }
 0x23b   :  { %v523_v59 = vmul.f32 0.01, %v453_v51  ;;  %1506 = vmatmul.mubr.f32.gmra.mrb[20].mxu0 %v538_v49  ;;  %vm507_vm7 = vcmp.ge.f32.partialorder %v453_v51, 0.0  ;;  %v1457_v60 = vpop.f32.mrb[8].mxu1 }
 0x23c   :  { %v468_v61 = vadd.f32 %v1457_v60, %v2027_v6  ;;  %v540_v62 = vsel %vm508_vm6, %v458_v47, %v524_v56  ;;  %v462_v63 = vpop.f32.mrb[9].mxu1  ;;  %1662 = vmatpush1.bf16.msra.mxu0 %v2047_v50  ;;  %v1649_v60 = vpack.c.bf16 %v825_v58, %v821_v57 }
 0x23d   :  { %v539_v1 = vsel %vm507_vm7, %v453_v51, %v523_v59  ;;  %v463_v2 = vadd.f32 %v2027_v6, %v462_v63  ;;  %1664 = vmatprep.subr.bf16.mxu0 %v2051_v53  ;;  %v815_v51 = vld [vmem:[#allocation10 + $0x190] sm:$0xff]  ;;  %v824_v59 = vld [vmem:[#allocation10 + $0x1d8] sm:$0xff] }
 0x23e   :  { %1508 = vmatprep.mubr.f32.mxu0 %v539_v1  ;;  %v526_v7 = vmul.f32 0.01, %v468_v61  ;;  %vm510_vm8 = vcmp.ge.f32.partialorder %v468_v61, 0.0  ;;  %v2081_v54 = vpack.c.bf16 %v819_v52, %v815_v51  ;;  %v827_v63 = vld [vmem:[#allocation10 + $0x1f0] sm:$0xff] }
 0x23f   :  { %1509 = vmatmul.mubr.f32.gmra.mrb[22].mxu0 %v540_v62  ;;  %v525_v10 = vmul.f32 0.01, %v463_v2  ;;  %vm509_vm9 = vcmp.ge.f32.partialorder %v463_v2, 0.0  ;;  %v1460_v11 = vpop.f32.mrb[10].mxu1  ;;  %v823_v62 = vld [vmem:[#allocation10 + $0x1d0] sm:$0xff] }
 0x240   :  { %v478_v12 = vadd.f32 %v1460_v11, %v2027_v6  ;;  %v542_v13 = vsel %vm510_vm8, %v468_v61, %v526_v7  ;;  %v472_v14 = vpop.f32.mrb[11].mxu1  ;;  %1666 = vmatpush1.bf16.msra.mxu0 %v2055_v0  ;;  %v828_v61 = vld [vmem:[#allocation10 + $0x1f8] sm:$0xff] }
 0x241   :  { %v541_v16 = vsel %vm509_vm9, %v463_v2, %v525_v10  ;;  %v473_v17 = vadd.f32 %v2027_v6, %v472_v14  ;;  %1668 = vmatprep.subr.bf16.mxu0 %v2059_v3  ;;  %v2084_v1 = vpack.c.bf16 %v828_v61, %v824_v59  ;;  %v2086_v2 = vpack.c.bf16 %v827_v63, %v823_v62 }
 0x242   :  { %1511 = vmatprep.mubr.f32.mxu0 %v541_v16  ;;  %v528_v23 = vmul.f32 0.01, %v478_v12  ;;  %vm512_vm10 = vcmp.ge.f32.partialorder %v478_v12, 0.0 }
 0x243   :  { %1512 = vmatmul.mubr.f32.gmra.mrb[24].mxu0 %v542_v13  ;;  %v527_v27 = vmul.f32 0.01, %v473_v17  ;;  %vm511_vm11 = vcmp.ge.f32.partialorder %v473_v17, 0.0  ;;  %v1463_v28 = vpop.f32.mrb[12].mxu1 }
 0x244   :  { %v488_v29 = vadd.f32 %v1463_v28, %v2027_v6  ;;  %v544_v21 = vsel %vm512_vm10, %v478_v12, %v528_v23  ;;  %v482_v30 = vpop.f32.mrb[13].mxu1  ;;  %1670 = vmatpush1.bf16.msra.mxu0 %v2063_v15 }
 0x245   :  { %v543_v32 = vsel %vm511_vm11, %v473_v17, %v527_v27  ;;  %v483_v34 = vadd.f32 %v2027_v6, %v482_v30  ;;  %1672 = vmatprep.subr.bf16.mxu0 %v2067_v18 }
 0x246   :  { %1514 = vmatprep.mubr.f32.mxu0 %v543_v32  ;;  %v530_v37 = vmul.f32 0.01, %v488_v29  ;;  %vm514_vm12 = vcmp.ge.f32.partialorder %v488_v29, 0.0 }
 0x247   :  { %1515 = vmatmul.mubr.f32.gmra.mrb[26].mxu0 %v544_v21  ;;  %v529_v39 = vmul.f32 0.01, %v483_v34  ;;  %vm513_vm13 = vcmp.ge.f32.partialorder %v483_v34, 0.0  ;;  %v1466_v40 = vpop.f32.mrb[14].mxu1 }
 0x248   :  { %v498_v41 = vadd.f32 %v1466_v40, %v2027_v6  ;;  %v546_v42 = vsel %vm514_vm12, %v488_v29, %v530_v37  ;;  %v492_v43 = vpop.f32.mrb[15].mxu1  ;;  %1674 = vmatpush1.bf16.msra.mxu0 %v2071_v31 }
 0x249   :  { %v545_v44 = vsel %vm513_vm13, %v483_v34, %v529_v39  ;;  %v493_v45 = vadd.f32 %v2027_v6, %v492_v43  ;;  %1676 = vmatprep.subr.bf16.mxu0 %v2075_v36  ;;  %v826_v6 = vld [vmem:[#allocation10 + $0x1e8] sm:$0xff] }
 0x24a   :  { %1517 = vmatprep.mubr.f32.mxu0 %v545_v44  ;;  %v532_v46 = vmul.f32 0.01, %v498_v41  ;;  %vm516_vm14 = vcmp.ge.f32.partialorder %v498_v41, 0.0  ;;  %v1647_v56 = vpack.c.bf16 %v826_v6, %v822_v55 }
 0x24b   :  { %1518 = vmatmul.mubr.f32.gmra.mrb[28].mxu0 %v546_v42  ;;  %v531_v47 = vmul.f32 0.01, %v493_v45  ;;  %vm515_vm15 = vcmp.ge.f32.partialorder %v493_v45, 0.0 }
 0x24c   :  { %v548_v48 = vsel %vm516_vm14, %v498_v41, %v532_v46  ;;  %1678 = vmatpush1.bf16.msra.mxu0 %v2081_v54  ;;  %1648 = vmatprep.subr.bf16.mxu1 %v1647_v56 }
 0x24d   :  { %v547_v49 = vsel %vm515_vm15, %v493_v45, %v531_v47  ;;  %1650 = vmatpush1.bf16.msra.mxu1 %v1649_v60  ;;  %1680 = vmatprep.subr.bf16.mxu0 %v2084_v1 }
 0x24e   :  { %1520 = vmatprep.mubr.f32.mxu0 %v547_v49  ;;  %1683 = vmatprep.subr.bf16.mxu1 %v2021_v33 }
 0x24f   :  { %1521 = vmatmul.mubr.f32.gmra.mrb[30].mxu0 %v548_v48 }
 0x250   :  { %1682 = vmatpush1.bf16.msra.mxu0 %v2086_v2  ;;  %1076 = vmatprep.mubr.f32.mxu0 %v1859_v4 }
 0x306   :  { %v1501_v7 = vpop.f32.mrb[16].mxu0 }
 0x307   :  { %v638_v8 = vpop.f32.mrb[17].mxu0  ;;  %v644_v9 = vadd.f32 %v1501_v7, %v2096_v5 }
 0x308   :  { %v639_v10 = vadd.f32 %v2096_v5, %v638_v8 }
 0x309   :  { %v734_v13 = vmul.f32 0.01, %v644_v9  ;;  %vm718_vm1 = vcmp.ge.f32.partialorder %v644_v9, 0.0 }
 0x30a   :  { %vm717_vm0 = vcmp.ge.f32.partialorder %v639_v10, 0.0  ;;  %v733_v33 = vmul.f32 0.01, %v639_v10  ;;  %v1504_v11 = vpop.f32.mrb[18].mxu0 }
 0x30b   :  { %v648_v12 = vpop.f32.mrb[19].mxu0  ;;  %v654_v22 = vadd.f32 %v1504_v11, %v2096_v5  ;;  %v750_v25 = vsel %vm718_vm1, %v644_v9, %v734_v13  ;;  %v829_v11 = vld [vmem:[%s2257_s8] sm:$0xf]  ;;  %s1860_s8 = smov [#allocation11]  }
 0x30c   :  { %v749_v14 = vsel %vm717_vm0, %v639_v10, %v733_v33  ;;  %v649_v16 = vadd.f32 %v2096_v5, %v648_v12  ;;  %s1242_s11 = sshll.u32 %s1860_s8, 4  ;;  %s1243_s11 = int_to_ptr.vmem [resolvable:$true] %s1242_s11 }
 0x30d   :  { %916 = vmatmul.mubr.f32.vlgmr.msra.gmra.mrb[16].mxu1 %v749_v14  ;;  %1077 = vmatmul.mubr.f32.vlgmr.msra.gmra.mrb[32].mxu0 %v749_v14  ;;  %v736_v27 = vmul.f32 0.01, %v654_v22  ;;  %vm720_vm3 = vcmp.ge.f32.partialorder %v654_v22, 0.0  ;;  %s1820_s13 = scalar_lea.vmem %s1243_s11, 8192  ;;  %p1825_p13 = scmp.lt.s32.totalorder %s1243_s11, %s1243_s11 }
 0x30e   :  { %1691 = vmatpush1.bf16.msra.mxu1 %v2032_v20  ;;  %v1507_v17 = vpop.f32.mrb[20].mxu0  ;;  %921 = vmatprep.mubr.f32.mxu1 %v1859_v4  ;;  %v735_v23 = vmul.f32 0.01, %v649_v16  ;;  %vm719_vm2 = vcmp.ge.f32.partialorder %v649_v16, 0.0  ;;  %p1821_p12 = scmp.ne.s32.totalorder %s1243_s11, %s1820_s13  ;;  %p1826_p0 = scmp.lt.s32.totalorder %s1820_s13, %s1820_s13 }
 0x30f   :  { %v658_v19 = vpop.f32.mrb[21].mxu0  ;;  %1082 = vmatprep.mubr.f32.mxu0 %v1859_v4  ;;  %1684 = vmatprep.subr.bf16.mxu1 %v2035_v24  ;;  %v664_v30 = vadd.f32 %v1507_v17, %v2096_v5  ;;  %v752_v32 = vsel %vm720_vm3, %v654_v22, %v736_v27 }
 0x310   :  { %v659_v28 = vadd.f32 %v2096_v5, %v658_v19  ;;  %v751_v29 = vsel %vm719_vm2, %v649_v16, %v735_v23  ;;  %p1827_p1 = por %p1826_p0, %p1825_p13 }
 0x311   :  { %922 = vmatmul.mubr.f32.gmra.mrb[18].mxu1 %v750_v25  ;;  %1083 = vmatmul.mubr.f32.gmra.mrb[34].mxu0 %v750_v25  ;;  %v738_v37 = vmul.f32 0.01, %v664_v30  ;;  %vm722_vm5 = vcmp.ge.f32.partialorder %v664_v30, 0.0 }
 0x312   :  { %v1510_v26 = vpop.f32.mrb[22].mxu0  ;;  %927 = vmatprep.mubr.f32.mxu1 %v1859_v4  ;;  %1088 = vmatprep.mubr.f32.mxu0 %v1859_v4  ;;  %vm721_vm4 = vcmp.ge.f32.partialorder %v659_v28, 0.0  ;;  %p1828_p2 = pnand %p1827_p1, %p1821_p12 }
 0x313   :  { %v668_v20 = vpop.f32.mrb[23].mxu0  ;;  %1692 = vmatpush1.bf16.msra.mxu1 %v2039_v35  ;;  %v737_v35 = vmul.f32 0.01, %v659_v28  ;;  %v674_v41 = vadd.f32 %v1510_v26, %v2096_v5  ;;  %v754_v42 = vsel %vm722_vm5, %v664_v30, %v738_v37 }
 0x314   :  { %1685 = vmatprep.subr.bf16.mxu1 %v2043_v38 }
 0x315   :  { %928 = vmatmul.mubr.f32.gmra.mrb[20].mxu1 %v751_v29  ;;  %1089 = vmatmul.mubr.f32.gmra.mrb[36].mxu0 %v751_v29  ;;  %v753_v39 = vsel %vm721_vm4, %v659_v28, %v737_v35  ;;  %v740_v44 = vmul.f32 0.01, %v674_v41  ;;  %vm724_vm7 = vcmp.ge.f32.partialorder %v674_v41, 0.0 }
 0x316   :  { %933 = vmatprep.mubr.f32.mxu1 %v1859_v4  ;;  %1094 = vmatprep.mubr.f32.mxu0 %v1859_v4  ;;  %v1513_v24 = vpop.f32.mrb[24].mxu0 }
 0x317   :  { %v678_v21 = vpop.f32.mrb[25].mxu0  ;;  %1693 = vmatpush1.bf16.msra.mxu1 %v2047_v50  ;;  %v669_v50 = vadd.f32 %v2096_v5, %v668_v20  ;;  %v756_v47 = vsel %vm724_vm7, %v674_v41, %v740_v44 }
 0x318   :  { %1686 = vmatprep.subr.bf16.mxu1 %v2051_v53 }
 0x319   :  { %934 = vmatmul.mubr.f32.gmra.mrb[22].mxu1 %v752_v32  ;;  %1095 = vmatmul.mubr.f32.gmra.mrb[38].mxu0 %v752_v32  ;;  %vm723_vm6 = vcmp.ge.f32.partialorder %v669_v50, 0.0 }
 0x31a   :  { %939 = vmatprep.mubr.f32.mxu1 %v1859_v4  ;;  %1100 = vmatprep.mubr.f32.mxu0 %v1859_v4  ;;  %v1516_v38 = vpop.f32.mrb[26].mxu0 }
 0x31b   :  { %v688_v34 = vpop.f32.mrb[27].mxu0  ;;  %1694 = vmatpush1.bf16.msra.mxu1 %v2055_v0  ;;  %v739_v0 = vmul.f32 0.01, %v669_v50  ;;  %v694_v49 = vadd.f32 %v1516_v38, %v2096_v5 }
 0x31c   :  { %1687 = vmatprep.subr.bf16.mxu1 %v2059_v3 }
 0x31d   :  { %940 = vmatmul.mubr.f32.gmra.mrb[24].mxu1 %v753_v39  ;;  %1101 = vmatmul.mubr.f32.gmra.mrb[40].mxu0 %v753_v39  ;;  %v755_v45 = vsel %vm723_vm6, %v669_v50, %v739_v0  ;;  %vm728_vm11 = vcmp.ge.f32.partialorder %v694_v49, 0.0 }
 0x31e   :  { %945 = vmatprep.mubr.f32.mxu1 %v1859_v4  ;;  %1106 = vmatprep.mubr.f32.mxu0 %v1859_v4  ;;  %v1519_v53 = vpop.f32.mrb[28].mxu0 }
 0x31f   :  { %v698_v40 = vpop.f32.mrb[29].mxu0  ;;  %1695 = vmatpush1.bf16.msra.mxu1 %v2063_v15  ;;  %v679_v15 = vadd.f32 %v2096_v5, %v678_v21  ;;  %v704_v56 = vadd.f32 %v1519_v53, %v2096_v5 }
 0x320   :  { %1688 = vmatprep.subr.bf16.mxu1 %v2067_v18  ;;  %v684_v18 = vadd.f32 %v1513_v24, %v2096_v5  ;;  %v699_v55 = vadd.f32 %v2096_v5, %v698_v40 }
 0x321   :  { %946 = vmatmul.mubr.f32.gmra.mrb[26].mxu1 %v754_v42  ;;  %1107 = vmatmul.mubr.f32.gmra.mrb[42].mxu0 %v754_v42  ;;  %v741_v46 = vmul.f32 0.01, %v679_v15  ;;  %vm725_vm8 = vcmp.ge.f32.partialorder %v679_v15, 0.0  ;;  %v746_v59 = vmul.f32 0.01, %v704_v56  ;;  %vm730_vm13 = vcmp.ge.f32.partialorder %v704_v56, 0.0 }
 0x322   :  { %951 = vmatprep.mubr.f32.mxu1 %v1859_v4  ;;  %1112 = vmatprep.mubr.f32.mxu0 %v1859_v4  ;;  %v1522_v3 = vpop.f32.mrb[30].mxu0  ;;  %vm726_vm9 = vcmp.ge.f32.partialorder %v684_v18, 0.0  ;;  %v745_v57 = vmul.f32 0.01, %v699_v55  ;;  %vm729_vm12 = vcmp.ge.f32.partialorder %v699_v55, 0.0 }
 0x323   :  { %v708_v43 = vpop.f32.mrb[31].mxu0  ;;  %1696 = vmatpush1.bf16.msra.mxu1 %v2071_v31  ;;  %v742_v31 = vmul.f32 0.01, %v684_v18  ;;  %v757_v48 = vsel %vm725_vm8, %v679_v15, %v741_v46  ;;  %v714_v62 = vadd.f32 %v1522_v3, %v2096_v5 }
 0x324   :  { %1689 = vmatprep.subr.bf16.mxu1 %v2075_v36  ;;  %v689_v36 = vadd.f32 %v2096_v5, %v688_v34  ;;  %v709_v60 = vadd.f32 %v2096_v5, %v708_v43  ;;  %v761_v61 = vsel %vm729_vm12, %v699_v55, %v745_v57  ;;  %v831_v5 = vlaneseq }
 0x325   :  { %952 = vmatmul.mubr.f32.gmra.mrb[28].mxu1 %v755_v45  ;;  %1113 = vmatmul.mubr.f32.gmra.mrb[44].mxu0 %v755_v45  ;;  %v758_v52 = vsel %vm726_vm9, %v684_v18, %v742_v31  ;;  %vm732_vm15 = vcmp.ge.f32.partialorder %v714_v62, 0.0 }
 0x326   :  { %957 = vmatprep.mubr.f32.mxu1 %v1859_v4  ;;  %1118 = vmatprep.mubr.f32.mxu0 %v1859_v4  ;;  %v743_v51 = vmul.f32 0.01, %v689_v36  ;;  %vm727_vm10 = vcmp.ge.f32.partialorder %v689_v36, 0.0  ;;  %v747_v63 = vmul.f32 0.01, %v709_v60  ;;  %vm731_vm14 = vcmp.ge.f32.partialorder %v709_v60, 0.0 }
 0x327   :  { %1697 = vmatpush1.bf16.msra.mxu1 %v2081_v54  ;;  %v744_v54 = vmul.f32 0.01, %v694_v49  ;;  %v832_v9 = vshrl.u32 %v831_v5, 7 }
 0x328   :  { %1690 = vmatprep.subr.bf16.mxu1 %v2084_v1  ;;  %v759_v6 = vsel %vm727_vm10, %v689_v36, %v743_v51  ;;  %v762_v1 = vsel %vm730_vm13, %v704_v56, %v746_v59  ;;  %v763_v7 = vsel %vm731_vm14, %v709_v60, %v747_v63 }
 0x329   :  { %958 = vmatmul.mubr.f32.gmra.mrb[30].mxu1 %v756_v47  ;;  %1119 = vmatmul.mubr.f32.gmra.mrb[46].mxu0 %v756_v47  ;;  %v760_v58 = vsel %vm728_vm11, %v694_v49, %v744_v54  ;;  %v833_v10 = vsub.s32 0, %v832_v9  ;;  %v841_v33 = vsub.s32 2, %v832_v9  ;;  %v837_v12 = vsub.s32 1, %v832_v9 }
 0x32a   :  { %963 = vmatprep.mubr.f32.mxu1 %v1859_v4  ;;  %1124 = vmatprep.mubr.f32.mxu0 %v1859_v4  ;;  %v845_v13 = vsub.s32 3, %v832_v9 }
 0x32b   :  { %1698 = vmatpush1.bf16.msra.mxu1 %v2086_v2  ;;  %v748_v2 = vmul.f32 0.01, %v714_v62  ;;  %v2162_v14 = vrot.slane %v829_v11, %v833_v10  ;;  %v2164_v16 = vrot.slane %v829_v11, %v841_v33  ;;  %v2166_v17 = vrot.slane %v829_v11, %v837_v12 }
 0x32c   :  { %v2168_v19 = vrot.slane %v829_v11, %v845_v13 }
 0x32d   :  { %964 = vmatmul.mubr.f32.gmra.mrb[32].mxu1 %v757_v48  ;;  %1125 = vmatmul.mubr.f32.gmra.mrb[48].mxu0 %v757_v48  ;;  %v764_v8 = vsel %vm732_vm15, %v714_v62, %v748_v2 }
 0x32e   :  { %969 = vmatprep.mubr.f32.mxu1 %v1859_v4  ;;  %1130 = vmatprep.mubr.f32.mxu0 %v1859_v4 }
 0x331   :  { %970 = vmatmul.mubr.f32.gmra.mrb[34].mxu1 %v758_v52  ;;  %1131 = vmatmul.mubr.f32.gmra.mrb[50].mxu0 %v758_v52 }
 0x332   :  { %975 = vmatprep.mubr.f32.mxu1 %v1859_v4  ;;  %1136 = vmatprep.mubr.f32.mxu0 %v1859_v4 }
 0x335   :  { %976 = vmatmul.mubr.f32.gmra.mrb[36].mxu1 %v759_v6  ;;  %1137 = vmatmul.mubr.f32.gmra.mrb[52].mxu0 %v759_v6 }
 0x336   :  { %981 = vmatprep.mubr.f32.mxu1 %v1859_v4  ;;  %1142 = vmatprep.mubr.f32.mxu0 %v1859_v4 }
 0x339   :  { %982 = vmatmul.mubr.f32.gmra.mrb[38].mxu1 %v760_v58  ;;  %1143 = vmatmul.mubr.f32.gmra.mrb[54].mxu0 %v760_v58 }
 0x33a   :  { %987 = vmatprep.mubr.f32.mxu1 %v1859_v4 }
 0x33d   :  { %988 = vmatmul.mubr.f32.gmra.mrb[40].mxu1 %v761_v61 }
 0x33e   :  { %993 = vmatprep.mubr.f32.mxu1 %v1859_v4 }
 0x341   :  { %994 = vmatmul.mubr.f32.gmra.mrb[42].mxu1 %v762_v1 }
 0x342   :  { %999 = vmatprep.mubr.f32.mxu1 %v1859_v4 }
 0x345   :  { %1000 = vmatmul.mubr.f32.gmra.mrb[44].mxu1 %v763_v7 }
 0x346   :  { %1005 = vmatprep.mubr.f32.mxu1 %v1859_v4 }
 0x349   :  { %1006 = vmatmul.mubr.f32.gmra.mrb[46].mxu1 %v764_v8 }
 0x34a   :  { %1148 = vmatprep.mubr.f32.mxu1 %v1859_v4 }
 0x34d   :  { %1149 = vmatmul.mubr.f32.vlgmr.msra.gmra.mrb[48].mxu1 %v761_v61 }
 0x34e   :  { %1154 = vmatprep.mubr.f32.mxu1 %v1859_v4 }
 0x351   :  { %1155 = vmatmul.mubr.f32.gmra.mrb[50].mxu1 %v762_v1 }
 0x352   :  { %1160 = vmatprep.mubr.f32.mxu1 %v1859_v4 }
 0x355   :  { %1161 = vmatmul.mubr.f32.gmra.mrb[52].mxu1 %v763_v7 }
 0x356   :  { %1166 = vmatprep.mubr.f32.mxu1 %v1859_v4 }
 0x359   :  { %1167 = vmatmul.mubr.f32.gmra.mrb[54].mxu1 %v764_v8 }
 0x3e0   :  { %v917_v4 = vpop.f32.mrb[16].mxu1  ;;  %v1078_v22 = vpop.f32.mrb[32].mxu0 }
 0x3e1   :  { %v918_v23 = vadd.f32 %v917_v4, %v2162_v14  ;;  %v1079_v25 = vadd.f32 %v1078_v22, %v2164_v16  ;;  %v919_v26 = vpop.f32.mrb[17].mxu1  ;;  %v1080_v20 = vpop.f32.mrb[33].mxu0 }
 0x3e2   :  { %v920_v27 = vadd.f32 %v919_v26, %v2166_v17  ;;  %v1081_v28 = vadd.f32 %v1080_v20, %v2168_v19 }
 0x3e3   :  { %1173 = vst [vmem:[#allocation11] sm:$0xff] %v918_v23  ;;  %1175 = vst [vmem:[#allocation11 + $0x10] sm:$0xff] %v1079_v25 }
 0x3e4   :  { %1174 = vst [vmem:[#allocation11 + $0x8] sm:$0xff] %v920_v27  ;;  %1176 = vst [vmem:[#allocation11 + $0x18] sm:$0xff] %v1081_v28  ;;  %v923_v29 = vpop.f32.mrb[18].mxu1  ;;  %v1084_v24 = vpop.f32.mrb[34].mxu0 }
 0x3e5   :  { %v924_v21 = vadd.f32 %v923_v29, %v2162_v14  ;;  %v1085_v30 = vadd.f32 %v1084_v24, %v2164_v16  ;;  %v925_v35 = vpop.f32.mrb[19].mxu1  ;;  %v1086_v32 = vpop.f32.mrb[35].mxu0 }
 0x3e6   :  { %v926_v38 = vadd.f32 %v925_v35, %v2166_v17  ;;  %v1087_v34 = vadd.f32 %v1086_v32, %v2168_v19 }
 0x3e7   :  { %1177 = vst [vmem:[#allocation11 + $0x20] sm:$0xff] %v924_v21  ;;  %1179 = vst [vmem:[#allocation11 + $0x30] sm:$0xff] %v1085_v30 }
 0x3e8   :  { %1178 = vst [vmem:[#allocation11 + $0x28] sm:$0xff] %v926_v38  ;;  %1180 = vst [vmem:[#allocation11 + $0x38] sm:$0xff] %v1087_v34  ;;  %v929_v37 = vpop.f32.mrb[20].mxu1  ;;  %v1090_v50 = vpop.f32.mrb[36].mxu0 }
 0x3e9   :  { %v930_v39 = vadd.f32 %v929_v37, %v2162_v14  ;;  %v1091_v53 = vadd.f32 %v1090_v50, %v2164_v16  ;;  %v931_v40 = vpop.f32.mrb[21].mxu1  ;;  %v1092_v41 = vpop.f32.mrb[37].mxu0 }
 0x3ea   :  { %v932_v0 = vadd.f32 %v931_v40, %v2166_v17  ;;  %v1093_v42 = vadd.f32 %v1092_v41, %v2168_v19 }
 0x3eb   :  { %1181 = vst [vmem:[#allocation11 + $0x40] sm:$0xff] %v930_v39  ;;  %1183 = vst [vmem:[#allocation11 + $0x50] sm:$0xff] %v1091_v53 }
 0x3ec   :  { %1182 = vst [vmem:[#allocation11 + $0x48] sm:$0xff] %v932_v0  ;;  %1184 = vst [vmem:[#allocation11 + $0x58] sm:$0xff] %v1093_v42  ;;  %v935_v3 = vpop.f32.mrb[22].mxu1  ;;  %v1096_v43 = vpop.f32.mrb[38].mxu0 }
 0x3ed   :  { %v936_v44 = vadd.f32 %v935_v3, %v2162_v14  ;;  %v1097_v15 = vadd.f32 %v1096_v43, %v2164_v16  ;;  %v937_v45 = vpop.f32.mrb[23].mxu1  ;;  %v1098_v18 = vpop.f32.mrb[39].mxu0 }
 0x3ee   :  { %v938_v46 = vadd.f32 %v937_v45, %v2166_v17  ;;  %v1099_v47 = vadd.f32 %v1098_v18, %v2168_v19 }
 0x3ef   :  { %1185 = vst [vmem:[#allocation11 + $0x60] sm:$0xff] %v936_v44  ;;  %1187 = vst [vmem:[#allocation11 + $0x70] sm:$0xff] %v1097_v15 }
 0x3f0   :  { %1186 = vst [vmem:[#allocation11 + $0x68] sm:$0xff] %v938_v46  ;;  %1188 = vst [vmem:[#allocation11 + $0x78] sm:$0xff] %v1099_v47  ;;  %v941_v31 = vpop.f32.mrb[24].mxu1  ;;  %v1102_v36 = vpop.f32.mrb[40].mxu0 }
 0x3f1   :  { %v942_v48 = vadd.f32 %v941_v31, %v2162_v14  ;;  %v1103_v49 = vadd.f32 %v1102_v36, %v2164_v16  ;;  %v943_v51 = vpop.f32.mrb[25].mxu1  ;;  %v1104_v52 = vpop.f32.mrb[41].mxu0 }
 0x3f2   :  { %v944_v54 = vadd.f32 %v943_v51, %v2166_v17  ;;  %v1105_v55 = vadd.f32 %v1104_v52, %v2168_v19 }
 0x3f3   :  { %1189 = vst [vmem:[#allocation11 + $0x80] sm:$0xff] %v942_v48  ;;  %1191 = vst [vmem:[#allocation11 + $0x90] sm:$0xff] %v1103_v49 }
 0x3f4   :  { %1190 = vst [vmem:[#allocation11 + $0x88] sm:$0xff] %v944_v54  ;;  %1192 = vst [vmem:[#allocation11 + $0x98] sm:$0xff] %v1105_v55  ;;  %v947_v6 = vpop.f32.mrb[26].mxu1  ;;  %v1108_v56 = vpop.f32.mrb[42].mxu0 }
 0x3f5   :  { %v948_v57 = vadd.f32 %v947_v6, %v2162_v14  ;;  %v1109_v58 = vadd.f32 %v1108_v56, %v2164_v16  ;;  %v949_v59 = vpop.f32.mrb[27].mxu1  ;;  %v1110_v60 = vpop.f32.mrb[43].mxu0 }
 0x3f6   :  { %v950_v61 = vadd.f32 %v949_v59, %v2166_v17  ;;  %v1111_v62 = vadd.f32 %v1110_v60, %v2168_v19 }
 0x3f7   :  { %1193 = vst [vmem:[#allocation11 + $0xa0] sm:$0xff] %v948_v57  ;;  %1195 = vst [vmem:[#allocation11 + $0xb0] sm:$0xff] %v1109_v58 }
 0x3f8   :  { %1194 = vst [vmem:[#allocation11 + $0xa8] sm:$0xff] %v950_v61  ;;  %1196 = vst [vmem:[#allocation11 + $0xb8] sm:$0xff] %v1111_v62  ;;  %v953_v63 = vpop.f32.mrb[28].mxu1  ;;  %v1114_v1 = vpop.f32.mrb[44].mxu0 }
 0x3f9   :  { %v954_v2 = vadd.f32 %v953_v63, %v2162_v14  ;;  %v1115_v7 = vadd.f32 %v1114_v1, %v2164_v16  ;;  %v955_v8 = vpop.f32.mrb[29].mxu1  ;;  %v1116_v5 = vpop.f32.mrb[45].mxu0 }
 0x3fa   :  { %v956_v9 = vadd.f32 %v955_v8, %v2166_v17  ;;  %v1117_v10 = vadd.f32 %v1116_v5, %v2168_v19 }
 0x3fb   :  { %1197 = vst [vmem:[#allocation11 + $0xc0] sm:$0xff] %v954_v2  ;;  %1199 = vst [vmem:[#allocation11 + $0xd0] sm:$0xff] %v1115_v7 }
 0x3fc   :  { %1198 = vst [vmem:[#allocation11 + $0xc8] sm:$0xff] %v956_v9  ;;  %1200 = vst [vmem:[#allocation11 + $0xd8] sm:$0xff] %v1117_v10  ;;  %v959_v33 = vpop.f32.mrb[30].mxu1  ;;  %v1120_v11 = vpop.f32.mrb[46].mxu0 }
 0x3fd   :  { %v960_v12 = vadd.f32 %v959_v33, %v2162_v14  ;;  %v1121_v13 = vadd.f32 %v1120_v11, %v2164_v16  ;;  %v961_v4 = vpop.f32.mrb[31].mxu1  ;;  %v1122_v22 = vpop.f32.mrb[47].mxu0 }
 0x3fe   :  { %v962_v23 = vadd.f32 %v961_v4, %v2166_v17  ;;  %v1123_v25 = vadd.f32 %v1122_v22, %v2168_v19 }
 0x3ff   :  { %1201 = vst [vmem:[#allocation11 + $0xe0] sm:$0xff] %v960_v12  ;;  %1203 = vst [vmem:[#allocation11 + $0xf0] sm:$0xff] %v1121_v13 }
 0x400   :  { %1202 = vst [vmem:[#allocation11 + $0xe8] sm:$0xff] %v962_v23  ;;  %1204 = vst [vmem:[#allocation11 + $0xf8] sm:$0xff] %v1123_v25  ;;  %v965_v26 = vpop.f32.mrb[32].mxu1  ;;  %v1126_v20 = vpop.f32.mrb[48].mxu0 }
 0x401   :  { %v966_v27 = vadd.f32 %v965_v26, %v2162_v14  ;;  %v1127_v28 = vadd.f32 %v1126_v20, %v2164_v16  ;;  %v967_v29 = vpop.f32.mrb[33].mxu1  ;;  %v1128_v24 = vpop.f32.mrb[49].mxu0 }
 0x402   :  { %v968_v21 = vadd.f32 %v967_v29, %v2166_v17  ;;  %v1129_v30 = vadd.f32 %v1128_v24, %v2168_v19 }
 0x403   :  { %1205 = vst [vmem:[#allocation11 + $0x100] sm:$0xff] %v966_v27  ;;  %1207 = vst [vmem:[#allocation11 + $0x110] sm:$0xff] %v1127_v28 }
 0x404   :  { %1206 = vst [vmem:[#allocation11 + $0x108] sm:$0xff] %v968_v21  ;;  %1208 = vst [vmem:[#allocation11 + $0x118] sm:$0xff] %v1129_v30  ;;  %v971_v35 = vpop.f32.mrb[34].mxu1  ;;  %v1132_v32 = vpop.f32.mrb[50].mxu0 }
 0x405   :  { %v972_v38 = vadd.f32 %v971_v35, %v2162_v14  ;;  %v1133_v34 = vadd.f32 %v1132_v32, %v2164_v16  ;;  %v973_v37 = vpop.f32.mrb[35].mxu1  ;;  %v1134_v50 = vpop.f32.mrb[51].mxu0 }
 0x406   :  { %v974_v39 = vadd.f32 %v973_v37, %v2166_v17  ;;  %v1135_v53 = vadd.f32 %v1134_v50, %v2168_v19 }
 0x407   :  { %1209 = vst [vmem:[#allocation11 + $0x120] sm:$0xff] %v972_v38  ;;  %1211 = vst [vmem:[#allocation11 + $0x130] sm:$0xff] %v1133_v34 }
 0x408   :  { %1210 = vst [vmem:[#allocation11 + $0x128] sm:$0xff] %v974_v39  ;;  %1212 = vst [vmem:[#allocation11 + $0x138] sm:$0xff] %v1135_v53  ;;  %v977_v40 = vpop.f32.mrb[36].mxu1  ;;  %v1138_v41 = vpop.f32.mrb[52].mxu0 }
 0x409   :  { %v978_v0 = vadd.f32 %v977_v40, %v2162_v14  ;;  %v1139_v42 = vadd.f32 %v1138_v41, %v2164_v16  ;;  %v979_v3 = vpop.f32.mrb[37].mxu1  ;;  %v1140_v43 = vpop.f32.mrb[53].mxu0 }
 0x40a   :  { %v980_v44 = vadd.f32 %v979_v3, %v2166_v17  ;;  %v1141_v15 = vadd.f32 %v1140_v43, %v2168_v19 }
 0x40b   :  { %1213 = vst [vmem:[#allocation11 + $0x140] sm:$0xff] %v978_v0  ;;  %1215 = vst [vmem:[#allocation11 + $0x150] sm:$0xff] %v1139_v42 }
 0x40c   :  { %1214 = vst [vmem:[#allocation11 + $0x148] sm:$0xff] %v980_v44  ;;  %1216 = vst [vmem:[#allocation11 + $0x158] sm:$0xff] %v1141_v15  ;;  %v983_v45 = vpop.f32.mrb[38].mxu1  ;;  %v1144_v18 = vpop.f32.mrb[54].mxu0 }
 0x40d   :  { %v984_v46 = vadd.f32 %v983_v45, %v2162_v14  ;;  %v1145_v47 = vadd.f32 %v1144_v18, %v2164_v16  ;;  %v985_v31 = vpop.f32.mrb[39].mxu1  ;;  %v1146_v36 = vpop.f32.mrb[55].mxu0 }
 0x40e   :  { %v986_v48 = vadd.f32 %v985_v31, %v2166_v17  ;;  %v1147_v49 = vadd.f32 %v1146_v36, %v2168_v19 }
 0x40f   :  { %1217 = vst [vmem:[#allocation11 + $0x160] sm:$0xff] %v984_v46  ;;  %1219 = vst [vmem:[#allocation11 + $0x170] sm:$0xff] %v1145_v47 }
 0x410   :  { %1218 = vst [vmem:[#allocation11 + $0x168] sm:$0xff] %v986_v48  ;;  %1220 = vst [vmem:[#allocation11 + $0x178] sm:$0xff] %v1147_v49  ;;  %v989_v51 = vpop.f32.mrb[40].mxu1 }
 0x411   :  { %v990_v52 = vadd.f32 %v989_v51, %v2162_v14  ;;  %v991_v54 = vpop.f32.mrb[41].mxu1 }
 0x412   :  { %v992_v55 = vadd.f32 %v991_v54, %v2166_v17 }
 0x413   :  { %1221 = vst [vmem:[#allocation11 + $0x180] sm:$0xff] %v990_v52 }
 0x414   :  { %1222 = vst [vmem:[#allocation11 + $0x188] sm:$0xff] %v992_v55  ;;  %v995_v6 = vpop.f32.mrb[42].mxu1 }
 0x415   :  { %v996_v56 = vadd.f32 %v995_v6, %v2162_v14  ;;  %v997_v57 = vpop.f32.mrb[43].mxu1 }
 0x416   :  { %v998_v58 = vadd.f32 %v997_v57, %v2166_v17 }
 0x417   :  { %1225 = vst [vmem:[#allocation11 + $0x1a0] sm:$0xff] %v996_v56 }
 0x418   :  { %1226 = vst [vmem:[#allocation11 + $0x1a8] sm:$0xff] %v998_v58  ;;  %v1001_v59 = vpop.f32.mrb[44].mxu1 }
 0x419   :  { %v1002_v60 = vadd.f32 %v1001_v59, %v2162_v14  ;;  %v1003_v61 = vpop.f32.mrb[45].mxu1 }
 0x41a   :  { %v1004_v62 = vadd.f32 %v1003_v61, %v2166_v17 }
 0x41b   :  { %1229 = vst [vmem:[#allocation11 + $0x1c0] sm:$0xff] %v1002_v60 }
 0x41c   :  { %1230 = vst [vmem:[#allocation11 + $0x1c8] sm:$0xff] %v1004_v62  ;;  %v1007_v63 = vpop.f32.mrb[46].mxu1 }
 0x41d   :  { %v1008_v1 = vadd.f32 %v1007_v63, %v2162_v14  ;;  %v1009_v2 = vpop.f32.mrb[47].mxu1 }
 0x41e   :  { %v1010_v7 = vadd.f32 %v1009_v2, %v2166_v17 }
 0x41f   :  { %1233 = vst [vmem:[#allocation11 + $0x1e0] sm:$0xff] %v1008_v1 }
 0x420   :  { %1234 = vst [vmem:[#allocation11 + $0x1e8] sm:$0xff] %v1010_v7  ;;  %v1150_v8 = vpop.f32.mrb[48].mxu1 }
 0x421   :  { %v1151_v5 = vadd.f32 %v1150_v8, %v2164_v16  ;;  %v1152_v9 = vpop.f32.mrb[49].mxu1 }
 0x422   :  { %v1153_v10 = vadd.f32 %v1152_v9, %v2168_v19 }
 0x423   :  { %1223 = vst [vmem:[#allocation11 + $0x190] sm:$0xff] %v1151_v5 }
 0x424   :  { %1224 = vst [vmem:[#allocation11 + $0x198] sm:$0xff] %v1153_v10  ;;  %v1156_v33 = vpop.f32.mrb[50].mxu1 }
 0x425   :  { %v1157_v11 = vadd.f32 %v1156_v33, %v2164_v16  ;;  %v1158_v12 = vpop.f32.mrb[51].mxu1 }
 0x426   :  { %v1159_v13 = vadd.f32 %v1158_v12, %v2168_v19 }
 0x427   :  { %1227 = vst [vmem:[#allocation11 + $0x1b0] sm:$0xff] %v1157_v11 }
 0x428   :  { %1228 = vst [vmem:[#allocation11 + $0x1b8] sm:$0xff] %v1159_v13  ;;  %v1162_v14 = vpop.f32.mrb[52].mxu1 }
 0x429   :  { %v1163_v17 = vadd.f32 %v1162_v14, %v2164_v16  ;;  %v1164_v4 = vpop.f32.mrb[53].mxu1 }
 0x42a   :  { %v1165_v22 = vadd.f32 %v1164_v4, %v2168_v19 }
 0x42b   :  { %1231 = vst [vmem:[#allocation11 + $0x1d0] sm:$0xff] %v1163_v17 }
 0x42c   :  { %1232 = vst [vmem:[#allocation11 + $0x1d8] sm:$0xff] %v1165_v22  ;;  %v1168_v23 = vpop.f32.mrb[54].mxu1 }
 0x42d   :  { %v1169_v25 = vadd.f32 %v1168_v23, %v2164_v16  ;;  %v1170_v26 = vpop.f32.mrb[55].mxu1 }
 0x42e   :  { %v1171_v20 = vadd.f32 %v1170_v26, %v2168_v19 }
 0x42f   :  { %1235 = vst [vmem:[#allocation11 + $0x1f0] sm:$0xff] %v1169_v25 }
 0x430   :  { %1236 = vst [vmem:[#allocation11 + $0x1f8] sm:$0xff] %v1171_v20 }
 0x431   :  { %1831 = shalt.err (!%p1828_p2)
}
 0x432   :  { %s1832_s14 = scalar_lea.hbm %s2258_s9, 8192 }
 0x433   :  { %p1833_p3 = scmp.ne.s32.totalorder %s2258_s9, %s1832_s14  ;;  %p1836_p4 = scmp.lt.u32.totalorder %s1832_s14, %s2258_s9 }
 0x435   :  { %p1838_p5 = pnand %p1836_p4, %p1833_p3 }
 0x437   :  { %1841 = shalt.err (!%p1838_p5)
}
 0x438   :  { %1248 = dma.vmem_to_hbm [thread:$0]  %s1243_s11, 8192, %s2258_s9, [#allocation4], %s1857_s3, %s1857_s3, %s1858_s21  }
 0x439   :  { %1848 = dma.done.wait [#allocation4], 8192  }
 0x43a   :  { %1849 = vsyncadd [#allocation4], 4294959104 }
 0x43b   :  { %1252 = vsyncpa [#allocation3], 1 }
 0x43c   :  { %1253 = vsyncpa [#allocation6], 1 }
 0x43d   :  { %1254 = vsyncpa [#allocation9], 1 }
 0x43e   :  { %1255 = vsyncpa [#allocation4], 1 }

</bundles_post_ra>
